<compile_context>
chip_gen: v7x
topology: tpu7x:2x2x1
jax: 0.10.0
libtpu: 0.0.40
codegen_flags: <defaults>
</compile_context>

<pallas_src>
import math
import functools

import jax
import jax.numpy as jnp
from jax.experimental import pallas as pl
from jax.experimental.pallas import tpu as pltpu


LN_EPS = 1e-5
# Set to jnp.bfloat16 on v6e/v7x at real sizes (accumulation stays f32 either way).
MXU_DTYPE = jnp.float32


def _mm(a, b):
    """MXU matmul with f32 accumulation (inputs optionally cast to MXU_DTYPE)."""
    return jnp.dot(a.astype(MXU_DTYPE), b.astype(MXU_DTYPE),
                   preferred_element_type=jnp.float32)


def _qk(a, b):
    """Contract last dims (q @ k^T) without an explicit transpose."""
    return jax.lax.dot_general(a.astype(MXU_DTYPE), b.astype(MXU_DTYPE),
                               (((1,), (1,)), ((), ())),
                               preferred_element_type=jnp.float32)


def _layernorm(s, g, b, eps):
    mu = jnp.mean(s, axis=-1, keepdims=True)
    var = jnp.mean((s - mu) ** 2, axis=-1, keepdims=True)
    return (s - mu) * jax.lax.rsqrt(var + eps) * g + b


# ----------------------------- Pallas kernels -----------------------------

def _attn_block_kernel(x_ref, kv_ref, mask_ref, wqkv_ref, bqkv_ref,
                       wo_ref, bo_ref, g_ref, b_ref, o_ref,
                       *, num_heads, is_self, eps):
    """Fused: QKV proj -> per-head masked softmax attention -> out proj
    -> residual add -> LayerNorm.  One grid step = one batch element."""
    D = x_ref.shape[-1]
    Dh = D // num_heads
    scale = 1.0 / math.sqrt(Dh)

    x = x_ref[0]            # [Sq, D]  (query input, also the residual)
    kv_in = kv_ref[0]       # [Sk, D]
    mask = mask_ref[...]    # [Sq, Sk] shared across batch/heads
    wqkv = wqkv_ref[...]    # [D, 3D]
    bqkv = bqkv_ref[...]    # [1, 3D]

    if is_self:
        qkv = _mm(x, wqkv) + bqkv                    # one fused [Sq, 3D] matmul
        q, k, v = qkv[:, :D], qkv[:, D:2 * D], qkv[:, 2 * D:]
    else:
        q = _mm(x, wqkv[:, :D]) + bqkv[:, :D]        # [Sq, D]
        kv = _mm(kv_in, wqkv[:, D:]) + bqkv[:, D:]   # fused K/V: [Sk, 2D]
        k, v = kv[:, :D], kv[:, D:]

    heads = []
    for h in range(num_heads):                       # static unroll, in-kernel head split
        sl = slice(h * Dh, (h + 1) * Dh)
        qh, kh, vh = q[:, sl], k[:, sl], v[:, sl]
        s = _qk(qh, kh) * scale                      # [Sq, Sk]
        s = jnp.where(mask > 0.0, s, -1e9)           # masked_fill(mask == 0, -1e9)
        s = s - jnp.max(s, axis=-1, keepdims=True)
        p = jnp.exp(s)
        p = p * pl.reciprocal(jnp.sum(p, axis=-1, keepdims=True), approx=True)
        heads.append(_mm(p, vh))                     # [Sq, Dh]
    ctx = jnp.concatenate(heads, axis=-1)            # [Sq, D]

    attn_out = _mm(ctx, wo_ref[...]) + bo_ref[...]   # output projection

    # Residual + LayerNorm epilogue (fused, no extra HBM pass).
    o_ref[0] = _layernorm(x + attn_out, g_ref[...], b_ref[...], eps).astype(o_ref.dtype)


def _ffn_block_kernel(x_ref, w1_ref, b1_ref, w2_ref, b2_ref, g_ref, b_ref, o_ref,
                      *, eps):
    """Fused: Linear -> ReLU -> Linear -> residual add -> LayerNorm."""
    x = x_ref[0]                                           # [S, D]
    h = jnp.maximum(_mm(x, w1_ref[...]) + b1_ref[...], 0.0)
    f = _mm(h, w2_ref[...]) + b2_ref[...]
    o_ref[0] = _layernorm(x + f, g_ref[...], b_ref[...], eps).astype(o_ref.dtype)


# ----------------------------- wrappers -----------------------------

def attn_block(x, kv, mask, wqkv, bqkv, wo, bo, g, b, *, num_heads, is_self,
               eps=LN_EPS):
    """x: [B, Sq, D], kv: [B, Sk, D], mask: [Sq, Sk]."""
    B, Sq, D = x.shape
    Sk = kv.shape[1]
    kernel = functools.partial(_attn_block_kernel, num_heads=num_heads,
                               is_self=is_self, eps=eps)
    return pl.pallas_call(
        kernel,
        out_shape=jax.ShapeDtypeStruct((B, Sq, D), jnp.float32),
        grid=(B,),
        in_specs=[
            pl.BlockSpec((1, Sq, D), lambda bb: (bb, 0, 0)),   # x (per batch)
            pl.BlockSpec((1, Sk, D), lambda bb: (bb, 0, 0)),   # kv (per batch)
            pl.BlockSpec((Sq, Sk), lambda bb: (0, 0)),         # shared mask
            pl.BlockSpec((D, 3 * D), lambda bb: (0, 0)),       # fused Wqkv
            pl.BlockSpec((1, 3 * D), lambda bb: (0, 0)),       # fused bqkv
            pl.BlockSpec((D, D), lambda bb: (0, 0)),           # Wo
            pl.BlockSpec((1, D), lambda bb: (0, 0)),           # bo
            pl.BlockSpec((1, D), lambda bb: (0, 0)),           # LN gamma
            pl.BlockSpec((1, D), lambda bb: (0, 0)),           # LN beta
        ],
        out_specs=pl.BlockSpec((1, Sq, D), lambda bb: (bb, 0, 0)),
        compiler_params=pltpu.CompilerParams(dimension_semantics=("parallel",)),
    )(x, kv, mask, wqkv, bqkv.reshape(1, -1), wo, bo.reshape(1, -1),
      g.reshape(1, -1), b.reshape(1, -1))


def ffn_block(x, w1, b1, w2, b2, g, b, *, eps=LN_EPS):
    """x: [B, S, D]; w1: [D, F]; w2: [F, D]."""
    B, S, D = x.shape
    F = w1.shape[1]
    kernel = functools.partial(_ffn_block_kernel, eps=eps)
    return pl.pallas_call(
        kernel,
        out_shape=jax.ShapeDtypeStruct((B, S, D), jnp.float32),
        grid=(B,),
        in_specs=[
            pl.BlockSpec((1, S, D), lambda bb: (bb, 0, 0)),
            pl.BlockSpec((D, F), lambda bb: (0, 0)),
            pl.BlockSpec((1, F), lambda bb: (0, 0)),
            pl.BlockSpec((F, D), lambda bb: (0, 0)),
            pl.BlockSpec((1, D), lambda bb: (0, 0)),
            pl.BlockSpec((1, D), lambda bb: (0, 0)),
            pl.BlockSpec((1, D), lambda bb: (0, 0)),
        ],
        out_specs=pl.BlockSpec((1, S, D), lambda bb: (bb, 0, 0)),
        compiler_params=pltpu.CompilerParams(dimension_semantics=("parallel",)),
    )(x, w1, b1.reshape(1, -1), w2, b2.reshape(1, -1),
      g.reshape(1, -1), b.reshape(1, -1))


def decoder_layer(p, tgt, memory, tgt_mask=None, memory_mask=None, num_heads=4):
    """Forward of the PyTorch DecoderLayer (dropout = identity / eval mode)."""
    B, S, D = tgt.shape
    Sm = memory.shape[1]
    if tgt_mask is None:
        tgt_mask = jnp.ones((S, S), jnp.float32)
    if memory_mask is None:
        memory_mask = jnp.ones((S, Sm), jnp.float32)

    x = attn_block(tgt, tgt, tgt_mask,
                   p["sa_wqkv"], p["sa_bqkv"], p["sa_wo"], p["sa_bo"],
                   p["ln1_g"], p["ln1_b"], num_heads=num_heads, is_self=True)
    x = attn_block(x, memory, memory_mask,
                   p["ca_wqkv"], p["ca_bqkv"], p["ca_wo"], p["ca_bo"],
                   p["ln2_g"], p["ln2_b"], num_heads=num_heads, is_self=False)
    x = ffn_block(x, p["ff_w1"], p["ff_b1"], p["ff_w2"], p["ff_b2"],
                  p["ln3_g"], p["ln3_b"])
    return x


# ----------------------------- params -----------------------------

def init_decoder_layer_params(key, d_model, d_ff):
    ks = jax.random.split(key, 12)          # exactly 12 random tensors needed
    r = lambda k, shape: 0.05 * jax.random.normal(k, shape, dtype=jnp.float32)
    return {
        "sa_wqkv": r(ks[0], (d_model, 3 * d_model)),
        "sa_bqkv": r(ks[1], (3 * d_model,)),
        "sa_wo":   r(ks[2], (d_model, d_model)),
        "sa_bo":   r(ks[3], (d_model,)),
        "ca_wqkv": r(ks[4], (d_model, 3 * d_model)),
        "ca_bqkv": r(ks[5], (3 * d_model,)),
        "ca_wo":   r(ks[6], (d_model, d_model)),
        "ca_bo":   r(ks[7], (d_model,)),
        "ff_w1":   r(ks[8], (d_model, d_ff)),
        "ff_b1":   r(ks[9], (d_ff,)),
        "ff_w2":   r(ks[10], (d_ff, d_model)),
        "ff_b2":   r(ks[11], (d_model,)),
        "ln1_g": jnp.ones((d_model,), jnp.float32),
        "ln1_b": jnp.zeros((d_model,), jnp.float32),
        "ln2_g": jnp.ones((d_model,), jnp.float32),
        "ln2_b": jnp.zeros((d_model,), jnp.float32),
        "ln3_g": jnp.ones((d_model,), jnp.float32),
        "ln3_b": jnp.zeros((d_model,), jnp.float32),
    }


# ----------------------------- pure-JAX reference -----------------------------

def _ref_ln(x, g, b, eps=LN_EPS):
    mu = jnp.mean(x, axis=-1, keepdims=True)
    var = jnp.mean((x - mu) ** 2, axis=-1, keepdims=True)
    return (x - mu) * jax.lax.rsqrt(var + eps) * g + b


def _ref_mha(x, kv, mask, wqkv, bqkv, wo, bo, num_heads):
    B, Sq, D = x.shape
    Sk = kv.shape[1]
    Dh = D // num_heads
    q = x @ wqkv[:, :D] + bqkv[:D]
    k = kv @ wqkv[:, D:2 * D] + bqkv[D:2 * D]
    v = kv @ wqkv[:, 2 * D:] + bqkv[2 * D:]

    def sp(t, S):
        return t.reshape(B, S, num_heads, Dh).transpose(0, 2, 1, 3)

    qh, kh, vh = sp(q, Sq), sp(k, Sk), sp(v, Sk)
    s = jnp.einsum("bhqd,bhkd->bhqk", qh, kh) / math.sqrt(Dh)
    if mask is not None:
        s = jnp.where(mask > 0.0, s, -1e9)
    p = jax.nn.softmax(s, axis=-1)
    o = jnp.einsum("bhqk,bhkd->bhqd", p, vh)
    o = o.transpose(0, 2, 1, 3).reshape(B, Sq, D)
    return o @ wo + bo


def ref_decoder_layer(p, tgt, memory, tgt_mask, memory_mask, num_heads):
    a = _ref_mha(tgt, tgt, tgt_mask, p["sa_wqkv"], p["sa_bqkv"],
                 p["sa_wo"], p["sa_bo"], num_heads)
    x = _ref_ln(tgt + a, p["ln1_g"], p["ln1_b"])
    c = _ref_mha(x, memory, memory_mask, p["ca_wqkv"], p["ca_bqkv"],
                 p["ca_wo"], p["ca_bo"], num_heads)
    x = _ref_ln(x + c, p["ln2_g"], p["ln2_b"])
    f = jnp.maximum(x @ p["ff_w1"] + p["ff_b1"], 0.0) @ p["ff_w2"] + p["ff_b2"]
    x = _ref_ln(x + f, p["ln3_g"], p["ln3_b"])
    return x


# ----------------------------- main -----------------------------

if __name__ == "__main__":
    D_MODEL, N_HEADS, D_FF = 32, 4, 64
    B, S_TGT, S_MEM = 2, 8, 8

    key = jax.random.PRNGKey(0)
    k_par, k_tgt, k_mem = jax.random.split(key, 3)

    params = init_decoder_layer_params(k_par, D_MODEL, D_FF)
    tgt = 0.1 * jax.random.normal(k_tgt, (B, S_TGT, D_MODEL), dtype=jnp.float32)
    memory = 0.1 * jax.random.normal(k_mem, (B, S_MEM, D_MODEL), dtype=jnp.float32)

    # Causal mask for self-attention (1 = attend, 0 = masked); no memory mask.
    tgt_mask = jnp.tril(jnp.ones((S_TGT, S_TGT), jnp.float32))

    fwd = jax.jit(functools.partial(decoder_layer, num_heads=N_HEADS))
    out = jax.block_until_ready(fwd(params, tgt, memory, tgt_mask, None))

    ref = jax.block_until_ready(
        ref_decoder_layer(params, tgt, memory, tgt_mask, None, N_HEADS))

    assert out.shape == (B, S_TGT, D_MODEL)
    assert bool(jnp.all(jnp.isfinite(out)))
    assert jnp.allclose(out, ref, atol=5e-3, rtol=5e-3)

    print("KERNEL_OK")
</pallas_src>

<mosaic_0001>
module attributes {stable_mosaic.version = 11 : i64} {
  func.func @_attn_block_kernel(%arg0: i32, %arg1: memref<1x8x32xf32, #tpu.memory_space<vmem>>, %arg2: memref<1x8x32xf32, #tpu.memory_space<vmem>>, %arg3: memref<8x8xf32, #tpu.memory_space<vmem>>, %arg4: memref<32x96xf32, #tpu.memory_space<vmem>>, %arg5: memref<1x96xf32, #tpu.memory_space<vmem>>, %arg6: memref<32x32xf32, #tpu.memory_space<vmem>>, %arg7: memref<1x32xf32, #tpu.memory_space<vmem>>, %arg8: memref<1x32xf32, #tpu.memory_space<vmem>>, %arg9: memref<1x32xf32, #tpu.memory_space<vmem>>, %arg10: memref<1x8x32xf32, #tpu.memory_space<vmem>>) attributes {dimension_semantics = [#tpu.dimension_semantics<parallel>], iteration_bounds = array<i64: 2>, scalar_prefetch = 0 : i64, scratch_operands = 0 : i64, tpu.core_type = #tpu.core_type<tc>, window_params = [{transform_indices = @transform_0, window_bounds = array<i64: 1, 8, 32>}, {transform_indices = @transform_1, window_bounds = array<i64: 1, 8, 32>}, {pipeline_mode = #tpu.pipeline_mode<synchronous>, transform_indices = @transform_2, window_bounds = array<i64: 8, 8>}, {pipeline_mode = #tpu.pipeline_mode<synchronous>, transform_indices = @transform_3, window_bounds = array<i64: 32, 96>}, {pipeline_mode = #tpu.pipeline_mode<synchronous>, transform_indices = @transform_4, window_bounds = array<i64: 1, 96>}, {pipeline_mode = #tpu.pipeline_mode<synchronous>, transform_indices = @transform_5, window_bounds = array<i64: 32, 32>}, {pipeline_mode = #tpu.pipeline_mode<synchronous>, transform_indices = @transform_6, window_bounds = array<i64: 1, 32>}, {pipeline_mode = #tpu.pipeline_mode<synchronous>, transform_indices = @transform_7, window_bounds = array<i64: 1, 32>}, {pipeline_mode = #tpu.pipeline_mode<synchronous>, transform_indices = @transform_8, window_bounds = array<i64: 1, 32>}, {transform_indices = @transform_9, window_bounds = array<i64: 1, 8, 32>}]} {
    %c0 = arith.constant 0 : index
    %c0_0 = arith.constant 0 : index
    %c0_1 = arith.constant 0 : index
    %0 = vector.load %arg1[%c0, %c0_0, %c0_1] : memref<1x8x32xf32, #tpu.memory_space<vmem>>, vector<1x8x32xf32>
    %1 = vector.shape_cast %0 : vector<1x8x32xf32> to vector<8x32xf32>
    %c0_2 = arith.constant 0 : index
    %c0_3 = arith.constant 0 : index
    %2 = vector.load %arg3[%c0_2, %c0_3] : memref<8x8xf32, #tpu.memory_space<vmem>>, vector<8x8xf32>
    %c0_4 = arith.constant 0 : index
    %c0_5 = arith.constant 0 : index
    %3 = vector.load %arg4[%c0_4, %c0_5] : memref<32x96xf32, #tpu.memory_space<vmem>>, vector<32x96xf32>
    %c0_6 = arith.constant 0 : index
    %c0_7 = arith.constant 0 : index
    %4 = vector.load %arg5[%c0_6, %c0_7] : memref<1x96xf32, #tpu.memory_space<vmem>>, vector<1x96xf32>
    %cst = arith.constant dense<0.000000e+00> : vector<8x96xf32>
    %5 = tpu.matmul %1, %3, %cst {dimension_numbers = #tpu.dot_dimension_numbers<[1], [0], [0], [1], [0, 0, 1, 1], [], []>} : vector<8x32xf32>, vector<32x96xf32>, vector<8x96xf32> -> vector<8x96xf32>
    %6 = vector.broadcast %4 : vector<1x96xf32> to vector<8x96xf32>
    %7 = arith.addf %5, %6 : vector<8x96xf32>
    %8 = vector.extract_strided_slice %7 {offsets = [0, 0], sizes = [8, 32], strides = [1, 1]} : vector<8x96xf32> to vector<8x32xf32>
    %9 = vector.extract_strided_slice %7 {offsets = [0, 32], sizes = [8, 32], strides = [1, 1]} : vector<8x96xf32> to vector<8x32xf32>
    %10 = vector.extract_strided_slice %7 {offsets = [0, 64], sizes = [8, 32], strides = [1, 1]} : vector<8x96xf32> to vector<8x32xf32>
    %11 = vector.extract_strided_slice %8 {offsets = [0, 0], sizes = [8, 8], strides = [1, 1]} : vector<8x32xf32> to vector<8x8xf32>
    %12 = vector.extract_strided_slice %9 {offsets = [0, 0], sizes = [8, 8], strides = [1, 1]} : vector<8x32xf32> to vector<8x8xf32>
    %13 = vector.extract_strided_slice %10 {offsets = [0, 0], sizes = [8, 8], strides = [1, 1]} : vector<8x32xf32> to vector<8x8xf32>
    %cst_8 = arith.constant dense<0.000000e+00> : vector<8x8xf32>
    %14 = tpu.matmul %11, %12, %cst_8 {dimension_numbers = #tpu.dot_dimension_numbers<[1], [1], [0], [0], [0, 0, 1, 0], [], []>} : vector<8x8xf32>, vector<8x8xf32>, vector<8x8xf32> -> vector<8x8xf32>
    %cst_9 = arith.constant 0.353553385 : f32
    %15 = vector.broadcast %cst_9 : f32 to vector<8x8xf32>
    %16 = arith.mulf %14, %15 : vector<8x8xf32>
    %cst_10 = arith.constant 0.000000e+00 : f32
    %17 = vector.broadcast %cst_10 : f32 to vector<8x8xf32>
    %18 = arith.cmpf ogt, %2, %17 : vector<8x8xf32>
    %cst_11 = arith.constant -1.000000e+09 : f32
    %19 = vector.broadcast %cst_11 : f32 to vector<8x8xf32>
    %20 = arith.select %18, %16, %19 : vector<8x8xi1>, vector<8x8xf32>
    %cst_12 = arith.constant dense<0xFF800000> : vector<8xf32>
    %21 = vector.multi_reduction <maximumf>, %20, %cst_12 [1] : vector<8x8xf32> to vector<8xf32>
    %22 = vector.shape_cast %21 : vector<8xf32> to vector<8x1xf32>
    %23 = vector.broadcast %22 : vector<8x1xf32> to vector<8x8xf32>
    %24 = arith.subf %20, %23 : vector<8x8xf32>
    %25 = math.exp %24 : vector<8x8xf32>
    %cst_13 = arith.constant dense<0.000000e+00> : vector<8xf32>
    %26 = vector.multi_reduction <add>, %25, %cst_13 [1] : vector<8x8xf32> to vector<8xf32>
    %27 = vector.shape_cast %26 : vector<8xf32> to vector<8x1xf32>
    %28 = tpu.reciprocal %27 {approx = true} : vector<8x1xf32> -> vector<8x1xf32>
    %29 = vector.broadcast %28 : vector<8x1xf32> to vector<8x8xf32>
    %30 = arith.mulf %25, %29 : vector<8x8xf32>
    %cst_14 = arith.constant dense<0.000000e+00> : vector<8x8xf32>
    %31 = tpu.matmul %30, %13, %cst_14 {dimension_numbers = #tpu.dot_dimension_numbers<[1], [0], [0], [1], [0, 0, 1, 1], [], []>} : vector<8x8xf32>, vector<8x8xf32>, vector<8x8xf32> -> vector<8x8xf32>
    %32 = vector.extract_strided_slice %8 {offsets = [0, 8], sizes = [8, 8], strides = [1, 1]} : vector<8x32xf32> to vector<8x8xf32>
    %33 = vector.extract_strided_slice %9 {offsets = [0, 8], sizes = [8, 8], strides = [1, 1]} : vector<8x32xf32> to vector<8x8xf32>
    %34 = vector.extract_strided_slice %10 {offsets = [0, 8], sizes = [8, 8], strides = [1, 1]} : vector<8x32xf32> to vector<8x8xf32>
    %cst_15 = arith.constant dense<0.000000e+00> : vector<8x8xf32>
    %35 = tpu.matmul %32, %33, %cst_15 {dimension_numbers = #tpu.dot_dimension_numbers<[1], [1], [0], [0], [0, 0, 1, 0], [], []>} : vector<8x8xf32>, vector<8x8xf32>, vector<8x8xf32> -> vector<8x8xf32>
    %cst_16 = arith.constant 0.353553385 : f32
    %36 = vector.broadcast %cst_16 : f32 to vector<8x8xf32>
    %37 = arith.mulf %35, %36 : vector<8x8xf32>
    %cst_17 = arith.constant 0.000000e+00 : f32
    %38 = vector.broadcast %cst_17 : f32 to vector<8x8xf32>
    %39 = arith.cmpf ogt, %2, %38 : vector<8x8xf32>
    %cst_18 = arith.constant -1.000000e+09 : f32
    %40 = vector.broadcast %cst_18 : f32 to vector<8x8xf32>
    %41 = arith.select %39, %37, %40 : vector<8x8xi1>, vector<8x8xf32>
    %cst_19 = arith.constant dense<0xFF800000> : vector<8xf32>
    %42 = vector.multi_reduction <maximumf>, %41, %cst_19 [1] : vector<8x8xf32> to vector<8xf32>
    %43 = vector.shape_cast %42 : vector<8xf32> to vector<8x1xf32>
    %44 = vector.broadcast %43 : vector<8x1xf32> to vector<8x8xf32>
    %45 = arith.subf %41, %44 : vector<8x8xf32>
    %46 = math.exp %45 : vector<8x8xf32>
    %cst_20 = arith.constant dense<0.000000e+00> : vector<8xf32>
    %47 = vector.multi_reduction <add>, %46, %cst_20 [1] : vector<8x8xf32> to vector<8xf32>
    %48 = vector.shape_cast %47 : vector<8xf32> to vector<8x1xf32>
    %49 = tpu.reciprocal %48 {approx = true} : vector<8x1xf32> -> vector<8x1xf32>
    %50 = vector.broadcast %49 : vector<8x1xf32> to vector<8x8xf32>
    %51 = arith.mulf %46, %50 : vector<8x8xf32>
    %cst_21 = arith.constant dense<0.000000e+00> : vector<8x8xf32>
    %52 = tpu.matmul %51, %34, %cst_21 {dimension_numbers = #tpu.dot_dimension_numbers<[1], [0], [0], [1], [0, 0, 1, 1], [], []>} : vector<8x8xf32>, vector<8x8xf32>, vector<8x8xf32> -> vector<8x8xf32>
    %53 = vector.extract_strided_slice %8 {offsets = [0, 16], sizes = [8, 8], strides = [1, 1]} : vector<8x32xf32> to vector<8x8xf32>
    %54 = vector.extract_strided_slice %9 {offsets = [0, 16], sizes = [8, 8], strides = [1, 1]} : vector<8x32xf32> to vector<8x8xf32>
    %55 = vector.extract_strided_slice %10 {offsets = [0, 16], sizes = [8, 8], strides = [1, 1]} : vector<8x32xf32> to vector<8x8xf32>
    %cst_22 = arith.constant dense<0.000000e+00> : vector<8x8xf32>
    %56 = tpu.matmul %53, %54, %cst_22 {dimension_numbers = #tpu.dot_dimension_numbers<[1], [1], [0], [0], [0, 0, 1, 0], [], []>} : vector<8x8xf32>, vector<8x8xf32>, vector<8x8xf32> -> vector<8x8xf32>
    %cst_23 = arith.constant 0.353553385 : f32
    %57 = vector.broadcast %cst_23 : f32 to vector<8x8xf32>
    %58 = arith.mulf %56, %57 : vector<8x8xf32>
    %cst_24 = arith.constant 0.000000e+00 : f32
    %59 = vector.broadcast %cst_24 : f32 to vector<8x8xf32>
    %60 = arith.cmpf ogt, %2, %59 : vector<8x8xf32>
    %cst_25 = arith.constant -1.000000e+09 : f32
    %61 = vector.broadcast %cst_25 : f32 to vector<8x8xf32>
    %62 = arith.select %60, %58, %61 : vector<8x8xi1>, vector<8x8xf32>
    %cst_26 = arith.constant dense<0xFF800000> : vector<8xf32>
    %63 = vector.multi_reduction <maximumf>, %62, %cst_26 [1] : vector<8x8xf32> to vector<8xf32>
    %64 = vector.shape_cast %63 : vector<8xf32> to vector<8x1xf32>
    %65 = vector.broadcast %64 : vector<8x1xf32> to vector<8x8xf32>
    %66 = arith.subf %62, %65 : vector<8x8xf32>
    %67 = math.exp %66 : vector<8x8xf32>
    %cst_27 = arith.constant dense<0.000000e+00> : vector<8xf32>
    %68 = vector.multi_reduction <add>, %67, %cst_27 [1] : vector<8x8xf32> to vector<8xf32>
    %69 = vector.shape_cast %68 : vector<8xf32> to vector<8x1xf32>
    %70 = tpu.reciprocal %69 {approx = true} : vector<8x1xf32> -> vector<8x1xf32>
    %71 = vector.broadcast %70 : vector<8x1xf32> to vector<8x8xf32>
    %72 = arith.mulf %67, %71 : vector<8x8xf32>
    %cst_28 = arith.constant dense<0.000000e+00> : vector<8x8xf32>
    %73 = tpu.matmul %72, %55, %cst_28 {dimension_numbers = #tpu.dot_dimension_numbers<[1], [0], [0], [1], [0, 0, 1, 1], [], []>} : vector<8x8xf32>, vector<8x8xf32>, vector<8x8xf32> -> vector<8x8xf32>
    %74 = vector.extract_strided_slice %8 {offsets = [0, 24], sizes = [8, 8], strides = [1, 1]} : vector<8x32xf32> to vector<8x8xf32>
    %75 = vector.extract_strided_slice %9 {offsets = [0, 24], sizes = [8, 8], strides = [1, 1]} : vector<8x32xf32> to vector<8x8xf32>
    %76 = vector.extract_strided_slice %10 {offsets = [0, 24], sizes = [8, 8], strides = [1, 1]} : vector<8x32xf32> to vector<8x8xf32>
    %cst_29 = arith.constant dense<0.000000e+00> : vector<8x8xf32>
    %77 = tpu.matmul %74, %75, %cst_29 {dimension_numbers = #tpu.dot_dimension_numbers<[1], [1], [0], [0], [0, 0, 1, 0], [], []>} : vector<8x8xf32>, vector<8x8xf32>, vector<8x8xf32> -> vector<8x8xf32>
    %cst_30 = arith.constant 0.353553385 : f32
    %78 = vector.broadcast %cst_30 : f32 to vector<8x8xf32>
    %79 = arith.mulf %77, %78 : vector<8x8xf32>
    %cst_31 = arith.constant 0.000000e+00 : f32
    %80 = vector.broadcast %cst_31 : f32 to vector<8x8xf32>
    %81 = arith.cmpf ogt, %2, %80 : vector<8x8xf32>
    %cst_32 = arith.constant -1.000000e+09 : f32
    %82 = vector.broadcast %cst_32 : f32 to vector<8x8xf32>
    %83 = arith.select %81, %79, %82 : vector<8x8xi1>, vector<8x8xf32>
    %cst_33 = arith.constant dense<0xFF800000> : vector<8xf32>
    %84 = vector.multi_reduction <maximumf>, %83, %cst_33 [1] : vector<8x8xf32> to vector<8xf32>
    %85 = vector.shape_cast %84 : vector<8xf32> to vector<8x1xf32>
    %86 = vector.broadcast %85 : vector<8x1xf32> to vector<8x8xf32>
    %87 = arith.subf %83, %86 : vector<8x8xf32>
    %88 = math.exp %87 : vector<8x8xf32>
    %cst_34 = arith.constant dense<0.000000e+00> : vector<8xf32>
    %89 = vector.multi_reduction <add>, %88, %cst_34 [1] : vector<8x8xf32> to vector<8xf32>
    %90 = vector.shape_cast %89 : vector<8xf32> to vector<8x1xf32>
    %91 = tpu.reciprocal %90 {approx = true} : vector<8x1xf32> -> vector<8x1xf32>
    %92 = vector.broadcast %91 : vector<8x1xf32> to vector<8x8xf32>
    %93 = arith.mulf %88, %92 : vector<8x8xf32>
    %cst_35 = arith.constant dense<0.000000e+00> : vector<8x8xf32>
    %94 = tpu.matmul %93, %76, %cst_35 {dimension_numbers = #tpu.dot_dimension_numbers<[1], [0], [0], [1], [0, 0, 1, 1], [], []>} : vector<8x8xf32>, vector<8x8xf32>, vector<8x8xf32> -> vector<8x8xf32>
    %95 = tpu.concatenate %31, %52, %73, %94 in 1 : vector<8x8xf32>, vector<8x8xf32>, vector<8x8xf32>, vector<8x8xf32> -> vector<8x32xf32>
    %c0_36 = arith.constant 0 : index
    %c0_37 = arith.constant 0 : index
    %96 = vector.load %arg6[%c0_36, %c0_37] : memref<32x32xf32, #tpu.memory_space<vmem>>, vector<32x32xf32>
    %cst_38 = arith.constant dense<0.000000e+00> : vector<8x32xf32>
    %97 = tpu.matmul %95, %96, %cst_38 {dimension_numbers = #tpu.dot_dimension_numbers<[1], [0], [0], [1], [0, 0, 1, 1], [], []>} : vector<8x32xf32>, vector<32x32xf32>, vector<8x32xf32> -> vector<8x32xf32>
    %c0_39 = arith.constant 0 : index
    %c0_40 = arith.constant 0 : index
    %98 = vector.load %arg7[%c0_39, %c0_40] : memref<1x32xf32, #tpu.memory_space<vmem>>, vector<1x32xf32>
    %99 = vector.broadcast %98 : vector<1x32xf32> to vector<8x32xf32>
    %100 = arith.addf %97, %99 : vector<8x32xf32>
    %101 = arith.addf %1, %100 : vector<8x32xf32>
    %c0_41 = arith.constant 0 : index
    %c0_42 = arith.constant 0 : index
    %102 = vector.load %arg8[%c0_41, %c0_42] : memref<1x32xf32, #tpu.memory_space<vmem>>, vector<1x32xf32>
    %c0_43 = arith.constant 0 : index
    %c0_44 = arith.constant 0 : index
    %103 = vector.load %arg9[%c0_43, %c0_44] : memref<1x32xf32, #tpu.memory_space<vmem>>, vector<1x32xf32>
    %cst_45 = arith.constant dense<0.000000e+00> : vector<8xf32>
    %104 = vector.multi_reduction <add>, %101, %cst_45 [1] : vector<8x32xf32> to vector<8xf32>
    %105 = vector.shape_cast %104 : vector<8xf32> to vector<8x1xf32>
    %cst_46 = arith.constant 3.200000e+01 : f32
    %106 = vector.broadcast %cst_46 : f32 to vector<8x1xf32>
    %107 = arith.divf %105, %106 : vector<8x1xf32>
    %108 = vector.broadcast %107 : vector<8x1xf32> to vector<8x32xf32>
    %109 = arith.subf %101, %108 : vector<8x32xf32>
    %110 = arith.mulf %109, %109 : vector<8x32xf32>
    %cst_47 = arith.constant dense<0.000000e+00> : vector<8xf32>
    %111 = vector.multi_reduction <add>, %110, %cst_47 [1] : vector<8x32xf32> to vector<8xf32>
    %112 = vector.shape_cast %111 : vector<8xf32> to vector<8x1xf32>
    %cst_48 = arith.constant 3.200000e+01 : f32
    %113 = vector.broadcast %cst_48 : f32 to vector<8x1xf32>
    %114 = arith.divf %112, %113 : vector<8x1xf32>
    %115 = vector.broadcast %107 : vector<8x1xf32> to vector<8x32xf32>
    %116 = arith.subf %101, %115 : vector<8x32xf32>
    %cst_49 = arith.constant 9.99999974E-6 : f32
    %117 = vector.broadcast %cst_49 : f32 to vector<8x1xf32>
    %118 = arith.addf %114, %117 : vector<8x1xf32>
    %119 = math.rsqrt %118 : vector<8x1xf32>
    %120 = vector.broadcast %119 : vector<8x1xf32> to vector<8x32xf32>
    %121 = arith.mulf %116, %120 : vector<8x32xf32>
    %122 = vector.broadcast %102 : vector<1x32xf32> to vector<8x32xf32>
    %123 = arith.mulf %121, %122 : vector<8x32xf32>
    %124 = vector.broadcast %103 : vector<1x32xf32> to vector<8x32xf32>
    %125 = arith.addf %123, %124 : vector<8x32xf32>
    %c0_50 = arith.constant 0 : index
    %c0_51 = arith.constant 0 : index
    %c0_52 = arith.constant 0 : index
    %126 = vector.load %arg10[%c0_50, %c0_51, %c0_52] : memref<1x8x32xf32, #tpu.memory_space<vmem>>, vector<1x8x32xf32>
    %127 = vector.shape_cast %126 : vector<1x8x32xf32> to vector<8x32xf32>
    %128 = vector.shape_cast %125 : vector<8x32xf32> to vector<1x8x32xf32>
    tpu.vector_store %arg10[%c0_50, %c0_51, %c0_52], %128 {strides = array<i32>} : memref<1x8x32xf32, #tpu.memory_space<vmem>>, vector<1x8x32xf32>,
    return
  }
  func.func @transform_0(%arg0: i32) -> (i32, i32, i32) {
    %c0_i32 = arith.constant 0 : i32
    %c0_i32_0 = arith.constant 0 : i32
    %c0_i32_1 = arith.constant 0 : i32
    return %arg0, %c0_i32, %c0_i32_0 : i32, i32, i32
  }
  func.func @transform_1(%arg0: i32) -> (i32, i32, i32) {
    %c0_i32 = arith.constant 0 : i32
    %c0_i32_0 = arith.constant 0 : i32
    %c0_i32_1 = arith.constant 0 : i32
    return %arg0, %c0_i32, %c0_i32_0 : i32, i32, i32
  }
  func.func @transform_2(%arg0: i32) -> (i32, i32) {
    %c0_i32 = arith.constant 0 : i32
    %c0_i32_0 = arith.constant 0 : i32
    %c0_i32_1 = arith.constant 0 : i32
    return %c0_i32, %c0_i32_0 : i32, i32
  }
  func.func @transform_3(%arg0: i32) -> (i32, i32) {
    %c0_i32 = arith.constant 0 : i32
    %c0_i32_0 = arith.constant 0 : i32
    %c0_i32_1 = arith.constant 0 : i32
    return %c0_i32, %c0_i32_0 : i32, i32
  }
  func.func @transform_4(%arg0: i32) -> (i32, i32) {
    %c0_i32 = arith.constant 0 : i32
    %c0_i32_0 = arith.constant 0 : i32
    %c0_i32_1 = arith.constant 0 : i32
    return %c0_i32, %c0_i32_0 : i32, i32
  }
  func.func @transform_5(%arg0: i32) -> (i32, i32) {
    %c0_i32 = arith.constant 0 : i32
    %c0_i32_0 = arith.constant 0 : i32
    %c0_i32_1 = arith.constant 0 : i32
    return %c0_i32, %c0_i32_0 : i32, i32
  }
  func.func @transform_6(%arg0: i32) -> (i32, i32) {
    %c0_i32 = arith.constant 0 : i32
    %c0_i32_0 = arith.constant 0 : i32
    %c0_i32_1 = arith.constant 0 : i32
    return %c0_i32, %c0_i32_0 : i32, i32
  }
  func.func @transform_7(%arg0: i32) -> (i32, i32) {
    %c0_i32 = arith.constant 0 : i32
    %c0_i32_0 = arith.constant 0 : i32
    %c0_i32_1 = arith.constant 0 : i32
    return %c0_i32, %c0_i32_0 : i32, i32
  }
  func.func @transform_8(%arg0: i32) -> (i32, i32) {
    %c0_i32 = arith.constant 0 : i32
    %c0_i32_0 = arith.constant 0 : i32
    %c0_i32_1 = arith.constant 0 : i32
    return %c0_i32, %c0_i32_0 : i32, i32
  }
  func.func @transform_9(%arg0: i32) -> (i32, i32, i32) {
    %c0_i32 = arith.constant 0 : i32
    %c0_i32_0 = arith.constant 0 : i32
    %c0_i32_1 = arith.constant 0 : i32
    return %arg0, %c0_i32, %c0_i32_0 : i32, i32, i32
  }
}

module attributes {stable_mosaic.version = 11 : i64} {
  func.func @_attn_block_kernel(%arg0: i32, %arg1: memref<1x8x32xf32, #tpu.memory_space<vmem>>, %arg2: memref<1x8x32xf32, #tpu.memory_space<vmem>>, %arg3: memref<8x8xf32, #tpu.memory_space<vmem>>, %arg4: memref<32x96xf32, #tpu.memory_space<vmem>>, %arg5: memref<1x96xf32, #tpu.memory_space<vmem>>, %arg6: memref<32x32xf32, #tpu.memory_space<vmem>>, %arg7: memref<1x32xf32, #tpu.memory_space<vmem>>, %arg8: memref<1x32xf32, #tpu.memory_space<vmem>>, %arg9: memref<1x32xf32, #tpu.memory_space<vmem>>, %arg10: memref<1x8x32xf32, #tpu.memory_space<vmem>>) attributes {dimension_semantics = [#tpu.dimension_semantics<parallel>], iteration_bounds = array<i64: 2>, scalar_prefetch = 0 : i64, scratch_operands = 0 : i64, tpu.core_type = #tpu.core_type<tc>, window_params = [{transform_indices = @transform_0, window_bounds = array<i64: 1, 8, 32>}, {transform_indices = @transform_1, window_bounds = array<i64: 1, 8, 32>}, {pipeline_mode = #tpu.pipeline_mode<synchronous>, transform_indices = @transform_2, window_bounds = array<i64: 8, 8>}, {pipeline_mode = #tpu.pipeline_mode<synchronous>, transform_indices = @transform_3, window_bounds = array<i64: 32, 96>}, {pipeline_mode = #tpu.pipeline_mode<synchronous>, transform_indices = @transform_4, window_bounds = array<i64: 1, 96>}, {pipeline_mode = #tpu.pipeline_mode<synchronous>, transform_indices = @transform_5, window_bounds = array<i64: 32, 32>}, {pipeline_mode = #tpu.pipeline_mode<synchronous>, transform_indices = @transform_6, window_bounds = array<i64: 1, 32>}, {pipeline_mode = #tpu.pipeline_mode<synchronous>, transform_indices = @transform_7, window_bounds = array<i64: 1, 32>}, {pipeline_mode = #tpu.pipeline_mode<synchronous>, transform_indices = @transform_8, window_bounds = array<i64: 1, 32>}, {transform_indices = @transform_9, window_bounds = array<i64: 1, 8, 32>}]} {
    %c0 = arith.constant 0 : index
    %c0_0 = arith.constant 0 : index
    %c0_1 = arith.constant 0 : index
    %0 = vector.load %arg1[%c0, %c0_0, %c0_1] : memref<1x8x32xf32, #tpu.memory_space<vmem>>, vector<1x8x32xf32>
    %1 = vector.shape_cast %0 : vector<1x8x32xf32> to vector<8x32xf32>
    %c0_2 = arith.constant 0 : index
    %c0_3 = arith.constant 0 : index
    %c0_4 = arith.constant 0 : index
    %2 = vector.load %arg2[%c0_2, %c0_3, %c0_4] : memref<1x8x32xf32, #tpu.memory_space<vmem>>, vector<1x8x32xf32>
    %3 = vector.shape_cast %2 : vector<1x8x32xf32> to vector<8x32xf32>
    %c0_5 = arith.constant 0 : index
    %c0_6 = arith.constant 0 : index
    %4 = vector.load %arg3[%c0_5, %c0_6] : memref<8x8xf32, #tpu.memory_space<vmem>>, vector<8x8xf32>
    %c0_7 = arith.constant 0 : index
    %c0_8 = arith.constant 0 : index
    %5 = vector.load %arg4[%c0_7, %c0_8] : memref<32x96xf32, #tpu.memory_space<vmem>>, vector<32x96xf32>
    %c0_9 = arith.constant 0 : index
    %c0_10 = arith.constant 0 : index
    %6 = vector.load %arg5[%c0_9, %c0_10] : memref<1x96xf32, #tpu.memory_space<vmem>>, vector<1x96xf32>
    %7 = vector.extract_strided_slice %5 {offsets = [0, 0], sizes = [32, 32], strides = [1, 1]} : vector<32x96xf32> to vector<32x32xf32>
    %cst = arith.constant dense<0.000000e+00> : vector<8x32xf32>
    %8 = tpu.matmul %1, %7, %cst {dimension_numbers = #tpu.dot_dimension_numbers<[1], [0], [0], [1], [0, 0, 1, 1], [], []>} : vector<8x32xf32>, vector<32x32xf32>, vector<8x32xf32> -> vector<8x32xf32>
    %9 = vector.extract_strided_slice %6 {offsets = [0, 0], sizes = [1, 32], strides = [1, 1]} : vector<1x96xf32> to vector<1x32xf32>
    %10 = vector.broadcast %9 : vector<1x32xf32> to vector<8x32xf32>
    %11 = arith.addf %8, %10 : vector<8x32xf32>
    %12 = vector.extract_strided_slice %5 {offsets = [0, 32], sizes = [32, 64], strides = [1, 1]} : vector<32x96xf32> to vector<32x64xf32>
    %cst_11 = arith.constant dense<0.000000e+00> : vector<8x64xf32>
    %13 = tpu.matmul %3, %12, %cst_11 {dimension_numbers = #tpu.dot_dimension_numbers<[1], [0], [0], [1], [0, 0, 1, 1], [], []>} : vector<8x32xf32>, vector<32x64xf32>, vector<8x64xf32> -> vector<8x64xf32>
    %14 = vector.extract_strided_slice %6 {offsets = [0, 32], sizes = [1, 64], strides = [1, 1]} : vector<1x96xf32> to vector<1x64xf32>
    %15 = vector.broadcast %14 : vector<1x64xf32> to vector<8x64xf32>
    %16 = arith.addf %13, %15 : vector<8x64xf32>
    %17 = vector.extract_strided_slice %16 {offsets = [0, 0], sizes = [8, 32], strides = [1, 1]} : vector<8x64xf32> to vector<8x32xf32>
    %18 = vector.extract_strided_slice %16 {offsets = [0, 32], sizes = [8, 32], strides = [1, 1]} : vector<8x64xf32> to vector<8x32xf32>
    %19 = vector.extract_strided_slice %11 {offsets = [0, 0], sizes = [8, 8], strides = [1, 1]} : vector<8x32xf32> to vector<8x8xf32>
    %20 = vector.extract_strided_slice %17 {offsets = [0, 0], sizes = [8, 8], strides = [1, 1]} : vector<8x32xf32> to vector<8x8xf32>
    %21 = vector.extract_strided_slice %18 {offsets = [0, 0], sizes = [8, 8], strides = [1, 1]} : vector<8x32xf32> to vector<8x8xf32>
    %cst_12 = arith.constant dense<0.000000e+00> : vector<8x8xf32>
    %22 = tpu.matmul %19, %20, %cst_12 {dimension_numbers = #tpu.dot_dimension_numbers<[1], [1], [0], [0], [0, 0, 1, 0], [], []>} : vector<8x8xf32>, vector<8x8xf32>, vector<8x8xf32> -> vector<8x8xf32>
    %cst_13 = arith.constant 0.353553385 : f32
    %23 = vector.broadcast %cst_13 : f32 to vector<8x8xf32>
    %24 = arith.mulf %22, %23 : vector<8x8xf32>
    %cst_14 = arith.constant 0.000000e+00 : f32
    %25 = vector.broadcast %cst_14 : f32 to vector<8x8xf32>
    %26 = arith.cmpf ogt, %4, %25 : vector<8x8xf32>
    %cst_15 = arith.constant -1.000000e+09 : f32
    %27 = vector.broadcast %cst_15 : f32 to vector<8x8xf32>
    %28 = arith.select %26, %24, %27 : vector<8x8xi1>, vector<8x8xf32>
    %cst_16 = arith.constant dense<0xFF800000> : vector<8xf32>
    %29 = vector.multi_reduction <maximumf>, %28, %cst_16 [1] : vector<8x8xf32> to vector<8xf32>
    %30 = vector.shape_cast %29 : vector<8xf32> to vector<8x1xf32>
    %31 = vector.broadcast %30 : vector<8x1xf32> to vector<8x8xf32>
    %32 = arith.subf %28, %31 : vector<8x8xf32>
    %33 = math.exp %32 : vector<8x8xf32>
    %cst_17 = arith.constant dense<0.000000e+00> : vector<8xf32>
    %34 = vector.multi_reduction <add>, %33, %cst_17 [1] : vector<8x8xf32> to vector<8xf32>
    %35 = vector.shape_cast %34 : vector<8xf32> to vector<8x1xf32>
    %36 = tpu.reciprocal %35 {approx = true} : vector<8x1xf32> -> vector<8x1xf32>
    %37 = vector.broadcast %36 : vector<8x1xf32> to vector<8x8xf32>
    %38 = arith.mulf %33, %37 : vector<8x8xf32>
    %cst_18 = arith.constant dense<0.000000e+00> : vector<8x8xf32>
    %39 = tpu.matmul %38, %21, %cst_18 {dimension_numbers = #tpu.dot_dimension_numbers<[1], [0], [0], [1], [0, 0, 1, 1], [], []>} : vector<8x8xf32>, vector<8x8xf32>, vector<8x8xf32> -> vector<8x8xf32>
    %40 = vector.extract_strided_slice %11 {offsets = [0, 8], sizes = [8, 8], strides = [1, 1]} : vector<8x32xf32> to vector<8x8xf32>
    %41 = vector.extract_strided_slice %17 {offsets = [0, 8], sizes = [8, 8], strides = [1, 1]} : vector<8x32xf32> to vector<8x8xf32>
    %42 = vector.extract_strided_slice %18 {offsets = [0, 8], sizes = [8, 8], strides = [1, 1]} : vector<8x32xf32> to vector<8x8xf32>
    %cst_19 = arith.constant dense<0.000000e+00> : vector<8x8xf32>
    %43 = tpu.matmul %40, %41, %cst_19 {dimension_numbers = #tpu.dot_dimension_numbers<[1], [1], [0], [0], [0, 0, 1, 0], [], []>} : vector<8x8xf32>, vector<8x8xf32>, vector<8x8xf32> -> vector<8x8xf32>
    %cst_20 = arith.constant 0.353553385 : f32
    %44 = vector.broadcast %cst_20 : f32 to vector<8x8xf32>
    %45 = arith.mulf %43, %44 : vector<8x8xf32>
    %cst_21 = arith.constant 0.000000e+00 : f32
    %46 = vector.broadcast %cst_21 : f32 to vector<8x8xf32>
    %47 = arith.cmpf ogt, %4, %46 : vector<8x8xf32>
    %cst_22 = arith.constant -1.000000e+09 : f32
    %48 = vector.broadcast %cst_22 : f32 to vector<8x8xf32>
    %49 = arith.select %47, %45, %48 : vector<8x8xi1>, vector<8x8xf32>
    %cst_23 = arith.constant dense<0xFF800000> : vector<8xf32>
    %50 = vector.multi_reduction <maximumf>, %49, %cst_23 [1] : vector<8x8xf32> to vector<8xf32>
    %51 = vector.shape_cast %50 : vector<8xf32> to vector<8x1xf32>
    %52 = vector.broadcast %51 : vector<8x1xf32> to vector<8x8xf32>
    %53 = arith.subf %49, %52 : vector<8x8xf32>
    %54 = math.exp %53 : vector<8x8xf32>
    %cst_24 = arith.constant dense<0.000000e+00> : vector<8xf32>
    %55 = vector.multi_reduction <add>, %54, %cst_24 [1] : vector<8x8xf32> to vector<8xf32>
    %56 = vector.shape_cast %55 : vector<8xf32> to vector<8x1xf32>
    %57 = tpu.reciprocal %56 {approx = true} : vector<8x1xf32> -> vector<8x1xf32>
    %58 = vector.broadcast %57 : vector<8x1xf32> to vector<8x8xf32>
    %59 = arith.mulf %54, %58 : vector<8x8xf32>
    %cst_25 = arith.constant dense<0.000000e+00> : vector<8x8xf32>
    %60 = tpu.matmul %59, %42, %cst_25 {dimension_numbers = #tpu.dot_dimension_numbers<[1], [0], [0], [1], [0, 0, 1, 1], [], []>} : vector<8x8xf32>, vector<8x8xf32>, vector<8x8xf32> -> vector<8x8xf32>
    %61 = vector.extract_strided_slice %11 {offsets = [0, 16], sizes = [8, 8], strides = [1, 1]} : vector<8x32xf32> to vector<8x8xf32>
    %62 = vector.extract_strided_slice %17 {offsets = [0, 16], sizes = [8, 8], strides = [1, 1]} : vector<8x32xf32> to vector<8x8xf32>
    %63 = vector.extract_strided_slice %18 {offsets = [0, 16], sizes = [8, 8], strides = [1, 1]} : vector<8x32xf32> to vector<8x8xf32>
    %cst_26 = arith.constant dense<0.000000e+00> : vector<8x8xf32>
    %64 = tpu.matmul %61, %62, %cst_26 {dimension_numbers = #tpu.dot_dimension_numbers<[1], [1], [0], [0], [0, 0, 1, 0], [], []>} : vector<8x8xf32>, vector<8x8xf32>, vector<8x8xf32> -> vector<8x8xf32>
    %cst_27 = arith.constant 0.353553385 : f32
    %65 = vector.broadcast %cst_27 : f32 to vector<8x8xf32>
    %66 = arith.mulf %64, %65 : vector<8x8xf32>
    %cst_28 = arith.constant 0.000000e+00 : f32
    %67 = vector.broadcast %cst_28 : f32 to vector<8x8xf32>
    %68 = arith.cmpf ogt, %4, %67 : vector<8x8xf32>
    %cst_29 = arith.constant -1.000000e+09 : f32
    %69 = vector.broadcast %cst_29 : f32 to vector<8x8xf32>
    %70 = arith.select %68, %66, %69 : vector<8x8xi1>, vector<8x8xf32>
    %cst_30 = arith.constant dense<0xFF800000> : vector<8xf32>
    %71 = vector.multi_reduction <maximumf>, %70, %cst_30 [1] : vector<8x8xf32> to vector<8xf32>
    %72 = vector.shape_cast %71 : vector<8xf32> to vector<8x1xf32>
    %73 = vector.broadcast %72 : vector<8x1xf32> to vector<8x8xf32>
    %74 = arith.subf %70, %73 : vector<8x8xf32>
    %75 = math.exp %74 : vector<8x8xf32>
    %cst_31 = arith.constant dense<0.000000e+00> : vector<8xf32>
    %76 = vector.multi_reduction <add>, %75, %cst_31 [1] : vector<8x8xf32> to vector<8xf32>
    %77 = vector.shape_cast %76 : vector<8xf32> to vector<8x1xf32>
    %78 = tpu.reciprocal %77 {approx = true} : vector<8x1xf32> -> vector<8x1xf32>
    %79 = vector.broadcast %78 : vector<8x1xf32> to vector<8x8xf32>
    %80 = arith.mulf %75, %79 : vector<8x8xf32>
    %cst_32 = arith.constant dense<0.000000e+00> : vector<8x8xf32>
    %81 = tpu.matmul %80, %63, %cst_32 {dimension_numbers = #tpu.dot_dimension_numbers<[1], [0], [0], [1], [0, 0, 1, 1], [], []>} : vector<8x8xf32>, vector<8x8xf32>, vector<8x8xf32> -> vector<8x8xf32>
    %82 = vector.extract_strided_slice %11 {offsets = [0, 24], sizes = [8, 8], strides = [1, 1]} : vector<8x32xf32> to vector<8x8xf32>
    %83 = vector.extract_strided_slice %17 {offsets = [0, 24], sizes = [8, 8], strides = [1, 1]} : vector<8x32xf32> to vector<8x8xf32>
    %84 = vector.extract_strided_slice %18 {offsets = [0, 24], sizes = [8, 8], strides = [1, 1]} : vector<8x32xf32> to vector<8x8xf32>
    %cst_33 = arith.constant dense<0.000000e+00> : vector<8x8xf32>
    %85 = tpu.matmul %82, %83, %cst_33 {dimension_numbers = #tpu.dot_dimension_numbers<[1], [1], [0], [0], [0, 0, 1, 0], [], []>} : vector<8x8xf32>, vector<8x8xf32>, vector<8x8xf32> -> vector<8x8xf32>
    %cst_34 = arith.constant 0.353553385 : f32
    %86 = vector.broadcast %cst_34 : f32 to vector<8x8xf32>
    %87 = arith.mulf %85, %86 : vector<8x8xf32>
    %cst_35 = arith.constant 0.000000e+00 : f32
    %88 = vector.broadcast %cst_35 : f32 to vector<8x8xf32>
    %89 = arith.cmpf ogt, %4, %88 : vector<8x8xf32>
    %cst_36 = arith.constant -1.000000e+09 : f32
    %90 = vector.broadcast %cst_36 : f32 to vector<8x8xf32>
    %91 = arith.select %89, %87, %90 : vector<8x8xi1>, vector<8x8xf32>
    %cst_37 = arith.constant dense<0xFF800000> : vector<8xf32>
    %92 = vector.multi_reduction <maximumf>, %91, %cst_37 [1] : vector<8x8xf32> to vector<8xf32>
    %93 = vector.shape_cast %92 : vector<8xf32> to vector<8x1xf32>
    %94 = vector.broadcast %93 : vector<8x1xf32> to vector<8x8xf32>
    %95 = arith.subf %91, %94 : vector<8x8xf32>
    %96 = math.exp %95 : vector<8x8xf32>
    %cst_38 = arith.constant dense<0.000000e+00> : vector<8xf32>
    %97 = vector.multi_reduction <add>, %96, %cst_38 [1] : vector<8x8xf32> to vector<8xf32>
    %98 = vector.shape_cast %97 : vector<8xf32> to vector<8x1xf32>
    %99 = tpu.reciprocal %98 {approx = true} : vector<8x1xf32> -> vector<8x1xf32>
    %100 = vector.broadcast %99 : vector<8x1xf32> to vector<8x8xf32>
    %101 = arith.mulf %96, %100 : vector<8x8xf32>
    %cst_39 = arith.constant dense<0.000000e+00> : vector<8x8xf32>
    %102 = tpu.matmul %101, %84, %cst_39 {dimension_numbers = #tpu.dot_dimension_numbers<[1], [0], [0], [1], [0, 0, 1, 1], [], []>} : vector<8x8xf32>, vector<8x8xf32>, vector<8x8xf32> -> vector<8x8xf32>
    %103 = tpu.concatenate %39, %60, %81, %102 in 1 : vector<8x8xf32>, vector<8x8xf32>, vector<8x8xf32>, vector<8x8xf32> -> vector<8x32xf32>
    %c0_40 = arith.constant 0 : index
    %c0_41 = arith.constant 0 : index
    %104 = vector.load %arg6[%c0_40, %c0_41] : memref<32x32xf32, #tpu.memory_space<vmem>>, vector<32x32xf32>
    %cst_42 = arith.constant dense<0.000000e+00> : vector<8x32xf32>
    %105 = tpu.matmul %103, %104, %cst_42 {dimension_numbers = #tpu.dot_dimension_numbers<[1], [0], [0], [1], [0, 0, 1, 1], [], []>} : vector<8x32xf32>, vector<32x32xf32>, vector<8x32xf32> -> vector<8x32xf32>
    %c0_43 = arith.constant 0 : index
    %c0_44 = arith.constant 0 : index
    %106 = vector.load %arg7[%c0_43, %c0_44] : memref<1x32xf32, #tpu.memory_space<vmem>>, vector<1x32xf32>
    %107 = vector.broadcast %106 : vector<1x32xf32> to vector<8x32xf32>
    %108 = arith.addf %105, %107 : vector<8x32xf32>
    %109 = arith.addf %1, %108 : vector<8x32xf32>
    %c0_45 = arith.constant 0 : index
    %c0_46 = arith.constant 0 : index
    %110 = vector.load %arg8[%c0_45, %c0_46] : memref<1x32xf32, #tpu.memory_space<vmem>>, vector<1x32xf32>
    %c0_47 = arith.constant 0 : index
    %c0_48 = arith.constant 0 : index
    %111 = vector.load %arg9[%c0_47, %c0_48] : memref<1x32xf32, #tpu.memory_space<vmem>>, vector<1x32xf32>
    %cst_49 = arith.constant dense<0.000000e+00> : vector<8xf32>
    %112 = vector.multi_reduction <add>, %109, %cst_49 [1] : vector<8x32xf32> to vector<8xf32>
    %113 = vector.shape_cast %112 : vector<8xf32> to vector<8x1xf32>
    %cst_50 = arith.constant 3.200000e+01 : f32
    %114 = vector.broadcast %cst_50 : f32 to vector<8x1xf32>
    %115 = arith.divf %113, %114 : vector<8x1xf32>
    %116 = vector.broadcast %115 : vector<8x1xf32> to vector<8x32xf32>
    %117 = arith.subf %109, %116 : vector<8x32xf32>
    %118 = arith.mulf %117, %117 : vector<8x32xf32>
    %cst_51 = arith.constant dense<0.000000e+00> : vector<8xf32>
    %119 = vector.multi_reduction <add>, %118, %cst_51 [1] : vector<8x32xf32> to vector<8xf32>
    %120 = vector.shape_cast %119 : vector<8xf32> to vector<8x1xf32>
    %cst_52 = arith.constant 3.200000e+01 : f32
    %121 = vector.broadcast %cst_52 : f32 to vector<8x1xf32>
    %122 = arith.divf %120, %121 : vector<8x1xf32>
    %123 = vector.broadcast %115 : vector<8x1xf32> to vector<8x32xf32>
    %124 = arith.subf %109, %123 : vector<8x32xf32>
    %cst_53 = arith.constant 9.99999974E-6 : f32
    %125 = vector.broadcast %cst_53 : f32 to vector<8x1xf32>
    %126 = arith.addf %122, %125 : vector<8x1xf32>
    %127 = math.rsqrt %126 : vector<8x1xf32>
    %128 = vector.broadcast %127 : vector<8x1xf32> to vector<8x32xf32>
    %129 = arith.mulf %124, %128 : vector<8x32xf32>
    %130 = vector.broadcast %110 : vector<1x32xf32> to vector<8x32xf32>
    %131 = arith.mulf %129, %130 : vector<8x32xf32>
    %132 = vector.broadcast %111 : vector<1x32xf32> to vector<8x32xf32>
    %133 = arith.addf %131, %132 : vector<8x32xf32>
    %c0_54 = arith.constant 0 : index
    %c0_55 = arith.constant 0 : index
    %c0_56 = arith.constant 0 : index
    %134 = vector.load %arg10[%c0_54, %c0_55, %c0_56] : memref<1x8x32xf32, #tpu.memory_space<vmem>>, vector<1x8x32xf32>
    %135 = vector.shape_cast %134 : vector<1x8x32xf32> to vector<8x32xf32>
    %136 = vector.shape_cast %133 : vector<8x32xf32> to vector<1x8x32xf32>
    tpu.vector_store %arg10[%c0_54, %c0_55, %c0_56], %136 {strides = array<i32>} : memref<1x8x32xf32, #tpu.memory_space<vmem>>, vector<1x8x32xf32>,
    return
  }
  func.func @transform_0(%arg0: i32) -> (i32, i32, i32) {
    %c0_i32 = arith.constant 0 : i32
    %c0_i32_0 = arith.constant 0 : i32
    %c0_i32_1 = arith.constant 0 : i32
    return %arg0, %c0_i32, %c0_i32_0 : i32, i32, i32
  }
  func.func @transform_1(%arg0: i32) -> (i32, i32, i32) {
    %c0_i32 = arith.constant 0 : i32
    %c0_i32_0 = arith.constant 0 : i32
    %c0_i32_1 = arith.constant 0 : i32
    return %arg0, %c0_i32, %c0_i32_0 : i32, i32, i32
  }
  func.func @transform_2(%arg0: i32) -> (i32, i32) {
    %c0_i32 = arith.constant 0 : i32
    %c0_i32_0 = arith.constant 0 : i32
    %c0_i32_1 = arith.constant 0 : i32
    return %c0_i32, %c0_i32_0 : i32, i32
  }
  func.func @transform_3(%arg0: i32) -> (i32, i32) {
    %c0_i32 = arith.constant 0 : i32
    %c0_i32_0 = arith.constant 0 : i32
    %c0_i32_1 = arith.constant 0 : i32
    return %c0_i32, %c0_i32_0 : i32, i32
  }
  func.func @transform_4(%arg0: i32) -> (i32, i32) {
    %c0_i32 = arith.constant 0 : i32
    %c0_i32_0 = arith.constant 0 : i32
    %c0_i32_1 = arith.constant 0 : i32
    return %c0_i32, %c0_i32_0 : i32, i32
  }
  func.func @transform_5(%arg0: i32) -> (i32, i32) {
    %c0_i32 = arith.constant 0 : i32
    %c0_i32_0 = arith.constant 0 : i32
    %c0_i32_1 = arith.constant 0 : i32
    return %c0_i32, %c0_i32_0 : i32, i32
  }
  func.func @transform_6(%arg0: i32) -> (i32, i32) {
    %c0_i32 = arith.constant 0 : i32
    %c0_i32_0 = arith.constant 0 : i32
    %c0_i32_1 = arith.constant 0 : i32
    return %c0_i32, %c0_i32_0 : i32, i32
  }
  func.func @transform_7(%arg0: i32) -> (i32, i32) {
    %c0_i32 = arith.constant 0 : i32
    %c0_i32_0 = arith.constant 0 : i32
    %c0_i32_1 = arith.constant 0 : i32
    return %c0_i32, %c0_i32_0 : i32, i32
  }
  func.func @transform_8(%arg0: i32) -> (i32, i32) {
    %c0_i32 = arith.constant 0 : i32
    %c0_i32_0 = arith.constant 0 : i32
    %c0_i32_1 = arith.constant 0 : i32
    return %c0_i32, %c0_i32_0 : i32, i32
  }
  func.func @transform_9(%arg0: i32) -> (i32, i32, i32) {
    %c0_i32 = arith.constant 0 : i32
    %c0_i32_0 = arith.constant 0 : i32
    %c0_i32_1 = arith.constant 0 : i32
    return %arg0, %c0_i32, %c0_i32_0 : i32, i32, i32
  }
}

module attributes {stable_mosaic.version = 11 : i64} {
  func.func @_ffn_block_kernel(%arg0: i32, %arg1: memref<1x8x32xf32, #tpu.memory_space<vmem>>, %arg2: memref<32x64xf32, #tpu.memory_space<vmem>>, %arg3: memref<1x64xf32, #tpu.memory_space<vmem>>, %arg4: memref<64x32xf32, #tpu.memory_space<vmem>>, %arg5: memref<1x32xf32, #tpu.memory_space<vmem>>, %arg6: memref<1x32xf32, #tpu.memory_space<vmem>>, %arg7: memref<1x32xf32, #tpu.memory_space<vmem>>, %arg8: memref<1x8x32xf32, #tpu.memory_space<vmem>>) attributes {dimension_semantics = [#tpu.dimension_semantics<parallel>], iteration_bounds = array<i64: 2>, scalar_prefetch = 0 : i64, scratch_operands = 0 : i64, tpu.core_type = #tpu.core_type<tc>, window_params = [{transform_indices = @transform_0, window_bounds = array<i64: 1, 8, 32>}, {pipeline_mode = #tpu.pipeline_mode<synchronous>, transform_indices = @transform_1, window_bounds = array<i64: 32, 64>}, {pipeline_mode = #tpu.pipeline_mode<synchronous>, transform_indices = @transform_2, window_bounds = array<i64: 1, 64>}, {pipeline_mode = #tpu.pipeline_mode<synchronous>, transform_indices = @transform_3, window_bounds = array<i64: 64, 32>}, {pipeline_mode = #tpu.pipeline_mode<synchronous>, transform_indices = @transform_4, window_bounds = array<i64: 1, 32>}, {pipeline_mode = #tpu.pipeline_mode<synchronous>, transform_indices = @transform_5, window_bounds = array<i64: 1, 32>}, {pipeline_mode = #tpu.pipeline_mode<synchronous>, transform_indices = @transform_6, window_bounds = array<i64: 1, 32>}, {transform_indices = @transform_7, window_bounds = array<i64: 1, 8, 32>}]} {
    %c0 = arith.constant 0 : index
    %c0_0 = arith.constant 0 : index
    %c0_1 = arith.constant 0 : index
    %0 = vector.load %arg1[%c0, %c0_0, %c0_1] : memref<1x8x32xf32, #tpu.memory_space<vmem>>, vector<1x8x32xf32>
    %1 = vector.shape_cast %0 : vector<1x8x32xf32> to vector<8x32xf32>
    %c0_2 = arith.constant 0 : index
    %c0_3 = arith.constant 0 : index
    %2 = vector.load %arg2[%c0_2, %c0_3] : memref<32x64xf32, #tpu.memory_space<vmem>>, vector<32x64xf32>
    %cst = arith.constant dense<0.000000e+00> : vector<8x64xf32>
    %3 = tpu.matmul %1, %2, %cst {dimension_numbers = #tpu.dot_dimension_numbers<[1], [0], [0], [1], [0, 0, 1, 1], [], []>} : vector<8x32xf32>, vector<32x64xf32>, vector<8x64xf32> -> vector<8x64xf32>
    %c0_4 = arith.constant 0 : index
    %c0_5 = arith.constant 0 : index
    %4 = vector.load %arg3[%c0_4, %c0_5] : memref<1x64xf32, #tpu.memory_space<vmem>>, vector<1x64xf32>
    %5 = vector.broadcast %4 : vector<1x64xf32> to vector<8x64xf32>
    %6 = arith.addf %3, %5 : vector<8x64xf32>
    %cst_6 = arith.constant 0.000000e+00 : f32
    %7 = vector.broadcast %cst_6 : f32 to vector<8x64xf32>
    %8 = arith.maximumf %6, %7 : vector<8x64xf32>
    %c0_7 = arith.constant 0 : index
    %c0_8 = arith.constant 0 : index
    %9 = vector.load %arg4[%c0_7, %c0_8] : memref<64x32xf32, #tpu.memory_space<vmem>>, vector<64x32xf32>
    %cst_9 = arith.constant dense<0.000000e+00> : vector<8x32xf32>
    %10 = tpu.matmul %8, %9, %cst_9 {dimension_numbers = #tpu.dot_dimension_numbers<[1], [0], [0], [1], [0, 0, 1, 1], [], []>} : vector<8x64xf32>, vector<64x32xf32>, vector<8x32xf32> -> vector<8x32xf32>
    %c0_10 = arith.constant 0 : index
    %c0_11 = arith.constant 0 : index
    %11 = vector.load %arg5[%c0_10, %c0_11] : memref<1x32xf32, #tpu.memory_space<vmem>>, vector<1x32xf32>
    %12 = vector.broadcast %11 : vector<1x32xf32> to vector<8x32xf32>
    %13 = arith.addf %10, %12 : vector<8x32xf32>
    %14 = arith.addf %1, %13 : vector<8x32xf32>
    %c0_12 = arith.constant 0 : index
    %c0_13 = arith.constant 0 : index
    %15 = vector.load %arg6[%c0_12, %c0_13] : memref<1x32xf32, #tpu.memory_space<vmem>>, vector<1x32xf32>
    %c0_14 = arith.constant 0 : index
    %c0_15 = arith.constant 0 : index
    %16 = vector.load %arg7[%c0_14, %c0_15] : memref<1x32xf32, #tpu.memory_space<vmem>>, vector<1x32xf32>
    %cst_16 = arith.constant dense<0.000000e+00> : vector<8xf32>
    %17 = vector.multi_reduction <add>, %14, %cst_16 [1] : vector<8x32xf32> to vector<8xf32>
    %18 = vector.shape_cast %17 : vector<8xf32> to vector<8x1xf32>
    %cst_17 = arith.constant 3.200000e+01 : f32
    %19 = vector.broadcast %cst_17 : f32 to vector<8x1xf32>
    %20 = arith.divf %18, %19 : vector<8x1xf32>
    %21 = vector.broadcast %20 : vector<8x1xf32> to vector<8x32xf32>
    %22 = arith.subf %14, %21 : vector<8x32xf32>
    %23 = arith.mulf %22, %22 : vector<8x32xf32>
    %cst_18 = arith.constant dense<0.000000e+00> : vector<8xf32>
    %24 = vector.multi_reduction <add>, %23, %cst_18 [1] : vector<8x32xf32> to vector<8xf32>
    %25 = vector.shape_cast %24 : vector<8xf32> to vector<8x1xf32>
    %cst_19 = arith.constant 3.200000e+01 : f32
    %26 = vector.broadcast %cst_19 : f32 to vector<8x1xf32>
    %27 = arith.divf %25, %26 : vector<8x1xf32>
    %28 = vector.broadcast %20 : vector<8x1xf32> to vector<8x32xf32>
    %29 = arith.subf %14, %28 : vector<8x32xf32>
    %cst_20 = arith.constant 9.99999974E-6 : f32
    %30 = vector.broadcast %cst_20 : f32 to vector<8x1xf32>
    %31 = arith.addf %27, %30 : vector<8x1xf32>
    %32 = math.rsqrt %31 : vector<8x1xf32>
    %33 = vector.broadcast %32 : vector<8x1xf32> to vector<8x32xf32>
    %34 = arith.mulf %29, %33 : vector<8x32xf32>
    %35 = vector.broadcast %15 : vector<1x32xf32> to vector<8x32xf32>
    %36 = arith.mulf %34, %35 : vector<8x32xf32>
    %37 = vector.broadcast %16 : vector<1x32xf32> to vector<8x32xf32>
    %38 = arith.addf %36, %37 : vector<8x32xf32>
    %c0_21 = arith.constant 0 : index
    %c0_22 = arith.constant 0 : index
    %c0_23 = arith.constant 0 : index
    %39 = vector.load %arg8[%c0_21, %c0_22, %c0_23] : memref<1x8x32xf32, #tpu.memory_space<vmem>>, vector<1x8x32xf32>
    %40 = vector.shape_cast %39 : vector<1x8x32xf32> to vector<8x32xf32>
    %41 = vector.shape_cast %38 : vector<8x32xf32> to vector<1x8x32xf32>
    tpu.vector_store %arg8[%c0_21, %c0_22, %c0_23], %41 {strides = array<i32>} : memref<1x8x32xf32, #tpu.memory_space<vmem>>, vector<1x8x32xf32>,
    return
  }
  func.func @transform_0(%arg0: i32) -> (i32, i32, i32) {
    %c0_i32 = arith.constant 0 : i32
    %c0_i32_0 = arith.constant 0 : i32
    %c0_i32_1 = arith.constant 0 : i32
    return %arg0, %c0_i32, %c0_i32_0 : i32, i32, i32
  }
  func.func @transform_1(%arg0: i32) -> (i32, i32) {
    %c0_i32 = arith.constant 0 : i32
    %c0_i32_0 = arith.constant 0 : i32
    %c0_i32_1 = arith.constant 0 : i32
    return %c0_i32, %c0_i32_0 : i32, i32
  }
  func.func @transform_2(%arg0: i32) -> (i32, i32) {
    %c0_i32 = arith.constant 0 : i32
    %c0_i32_0 = arith.constant 0 : i32
    %c0_i32_1 = arith.constant 0 : i32
    return %c0_i32, %c0_i32_0 : i32, i32
  }
  func.func @transform_3(%arg0: i32) -> (i32, i32) {
    %c0_i32 = arith.constant 0 : i32
    %c0_i32_0 = arith.constant 0 : i32
    %c0_i32_1 = arith.constant 0 : i32
    return %c0_i32, %c0_i32_0 : i32, i32
  }
  func.func @transform_4(%arg0: i32) -> (i32, i32) {
    %c0_i32 = arith.constant 0 : i32
    %c0_i32_0 = arith.constant 0 : i32
    %c0_i32_1 = arith.constant 0 : i32
    return %c0_i32, %c0_i32_0 : i32, i32
  }
  func.func @transform_5(%arg0: i32) -> (i32, i32) {
    %c0_i32 = arith.constant 0 : i32
    %c0_i32_0 = arith.constant 0 : i32
    %c0_i32_1 = arith.constant 0 : i32
    return %c0_i32, %c0_i32_0 : i32, i32
  }
  func.func @transform_6(%arg0: i32) -> (i32, i32) {
    %c0_i32 = arith.constant 0 : i32
    %c0_i32_0 = arith.constant 0 : i32
    %c0_i32_1 = arith.constant 0 : i32
    return %c0_i32, %c0_i32_0 : i32, i32
  }
  func.func @transform_7(%arg0: i32) -> (i32, i32, i32) {
    %c0_i32 = arith.constant 0 : i32
    %c0_i32_0 = arith.constant 0 : i32
    %c0_i32_1 = arith.constant 0 : i32
    return %arg0, %c0_i32, %c0_i32_0 : i32, i32, i32
  }
}

</mosaic_0001>

<bundles_post_ra>
// kernel: decoder_layer.5
= control target key start
LH: loop header
LB: loop body
LE: loop exit
PB: predicated region body
PF: predicated region fallthrough
CT: control target
= control target key end

     0   :  { %12 = vsyncpa [#allocation3], 0  ;;  %s937_s0 = inlined_call_operand.vmem [shape: f32[2,8,32], index: 0, kind: input, shape index: {}]   ;;  %s938_s1 = inlined_call_operand.vmem [shape: f32[32,64], index: 1, kind: input, shape index: {}]   ;;  %s939_s2 = inlined_call_operand.vmem [shape: f32[1,64], index: 2, kind: input, shape index: {}]   ;;  %s940_s3 = inlined_call_operand.vmem [shape: f32[64,32], index: 3, kind: input, shape index: {}]   ;;  %s941_s4 = inlined_call_operand.vmem [shape: f32[1,32], index: 4, kind: input, shape index: {}]   ;;  %s942_s5 = inlined_call_operand.vmem [shape: f32[1,32], index: 5, kind: input, shape index: {}]   ;;  %s943_s6 = inlined_call_operand.vmem [shape: f32[1,32], index: 6, kind: input, shape index: {}]   ;;  %s944_s7 = inlined_call_operand.hbm [shape: f32[2,8,32], index: 7, kind: output, shape index: {}]  }
   0x1   :  { %14 = vsyncpa [#allocation3 + $0x1], 0  ;;  %s785_s24 = smov 0   ;;  %s787_s25 = smov 0  }
   0x2   :  { %s789_s26 = smov 0   ;;  %s791_s27 = smov 0  }
   0x3 LB: > { %s806_s28 = sadd.s32 4294967295, %s739_s27   ;;  %s555_s29 = sadd.s32 4294967294, %s739_s27   ;;  %s739_s27 = sphi %s791_s27, %s950_s27   ;;  %s735_s26 = sphi %s789_s26, %s949_s26   ;;  %s731_s25 = sphi %s787_s25, %s948_s25   ;;  %s727_s24 = sphi %s785_s24, %s947_s24  }
   0x4   : > { %s810_s30 = sadd.s32 1, %s739_s27   ;;  %s179_s8 = sadd.s32 1, %s735_s26 }
   0x5   : > { %s176_s9 = ssub.s32 %s739_s27, %s810_s30  ;;  %p189_p0 = scmp.ne.s32.totalorder %s735_s26, %s731_s25 }
   0x6   : > { %p177_p1 = scmp.eq.s32.totalorder %s176_s9, 0  ;;  %p190_p2 = scmp.eq.s32.totalorder %s806_s28, 1 }
   0x7   : > { %p195_p3 = scmp.ne.s32.totalorder %s731_s25, %s727_s24  ;;  %p196_p4 = scmp.eq.s32.totalorder %s555_s29, 1 }
   0x8   : > { %s821_s10 = scalar_select %p177_p1, %s735_s26, %s179_s8  }
   0x9   : > { %p823_p5 = por %p190_p2, %p189_p0  ;;  %p827_p6 = por %p196_p4, %p195_p3 }
   0xa   : > { %p558_p7 = scmp.ge.s32.totalorder %s739_s27, 1  ;;  %p239_p8 = scmp.lt.s32.totalorder %s739_s27, 3 }
   0xc   : > { %p240_p9 = pnand %p558_p7, %p239_p8 }
   0xd   : > { %v275_v0 = vld [vmem:[%s938_s1] sm:$0xff] (!%p240_p9)  ;;  %v276_v1 = vld [vmem:[%s938_s1 + $0x8] sm:$0xff] (!%p240_p9)  ;;  %v277_v2 = vld [vmem:[%s938_s1 + $0x10] sm:$0xff] (!%p240_p9)  ;;  %v741_v3 = vmov (!%p240_p9), 0.0|0.0   ;;  %vm742_vm0 = vmmov (!%p240_p9), 0   ;;  %v743_v6 = vmov (!%p240_p9), 0.0  }
   0xe   : > { %243 = sbr.rel (%p240_p9) target bundleno = 785 (0x311), region = 48  ;;  %615 = vmatprep.subr.bf16.mxu0 (!%p240_p9), %v741_v3  ;;  %v616_v4 = vpack.c.bf16 (!%p240_p9), %v276_v1, %v275_v0  ;;  %v278_v5 = vld [vmem:[%s938_s1 + $0x18] sm:$0xff] (!%p240_p9)  ;;  %593 = vmatprep.mubr.msk.f32.mxu0 (!%p240_p9), %vm742_vm0, %v743_v6  ;;  %p270_p10 = scmp.lt.s32.totalorder (!%p240_p9), %s806_s28, 1  ;;  %v361_v7 = vld [vmem:[%s940_s3] sm:$0xff] (!%p240_p9)  ;;  %v362_v8 = vld [vmem:[%s940_s3 + $0x8] sm:$0xff] (!%p240_p9)  ;;  %vm286_vm1 = vcmask (!%p240_p9), 261120  }
   0xf   : > { %621 = vmatprep.subr.bf16.mxu1 (!%p240_p9), %v741_v3  ;;  %v622_v9 = vpack.c.bf16 (!%p240_p9), %v362_v8, %v361_v7  ;;  %v363_v10 = vld [vmem:[%s940_s3 + $0x10] sm:$0xff] (!%p240_p9)  ;;  %v364_v11 = vld [vmem:[%s940_s3 + $0x18] sm:$0xff] (!%p240_p9)  ;;  %612 = vmatprep.mubr.msk.f32.mxu1 (!%p240_p9), %vm742_vm0, %v743_v6  ;;  %v619_v12 = vpack.c.bf16 (!%p240_p9), %v278_v5, %v277_v2  ;;  %v365_v14 = vld [vmem:[%s940_s3 + $0x20] sm:$0xff] (!%p240_p9)  ;;  %vm376_vm2 = vcmask (!%p240_p9), 523264   ;;  %s267_s18 = sand.u32 (!%p240_p9), 1, %s731_s25   ;;  %s568_s29 = sshll.u32 (!%p240_p9), %s806_s28, 7 }
  0x10   : > { %617 = vmatpush3.bf16.msra.mxu0 (!%p240_p9), %v616_v4  ;;  %v625_v13 = vpack.c.bf16 (!%p240_p9), %v364_v11, %v363_v10  ;;  %v366_v15 = vld [vmem:[%s940_s3 + $0x28] sm:$0xff] (!%p240_p9)  ;;  %v367_v18 = vld [vmem:[%s940_s3 + $0x30] sm:$0xff] (!%p240_p9)  ;;  %v368_v19 = vld [vmem:[%s940_s3 + $0x38] sm:$0xff] (!%p240_p9)  ;;  %s559_s19 = sshll.u32 (!%p240_p9), %s267_s18, 3 }
  0x11   : > { %618 = vmatprep.subr.bf16.mxu0 (!%p240_p9), %v741_v3  ;;  %623 = vmatpush3.bf16.msra.mxu1 (!%p240_p9), %v622_v9  ;;  %v628_v17 = vpack.c.bf16 (!%p240_p9), %v366_v15, %v365_v14  ;;  %v631_v20 = vpack.c.bf16 (!%p240_p9), %v368_v19, %v367_v18  ;;  %v561_v21 = vld [vmem:[%s939_s2] ss:$0 sm:$0xff] (!%p240_p9)  ;;  %s269_s8 = scalar_lea.vmem (!%p240_p9), [#allocation2], %s559_s19 }
  0x12   : > { %624 = vmatprep.subr.bf16.mxu1 (!%p240_p9), %v741_v3  ;;  %v563_v26 = vld [vmem:[%s941_s4] ss:$0 sm:$0xff] (!%p240_p9)  ;;  %s496_s9 = sshll.u32 (!%p240_p9), %s269_s8, 4  ;;  %s896_s9 = int_to_ptr.vmem [resolvable:$true] %s496_s9 }
  0x13   : > { %v565_v41 = vld [vmem:[%s942_s5] ss:$0 sm:$0xff] (!%p240_p9)  ;;  %s677_s17 = scalar_lea.vmem (!%p240_p9), %s896_s9, 128 }
  0x14   : > { %620 = vmatpush3.bf16.msra.mxu0 (!%p240_p9), %v619_v12  ;;  %v566_v43 = vld [vmem:[%s943_s6] ss:$0 sm:$0xff] (!%p240_p9)  ;;  %p678_p11 = scmp.ne.s32.totalorder (!%p240_p9), %s896_s9, %s677_s17 }
  0x15   : > { %s271_s15 = scalar_select %p270_p10, %s806_s28, 1  ;;  %626 = vmatpush3.bf16.msra.mxu1 %v625_v13 }
  0x16   : > { %627 = vmatprep.subr.bf16.mxu1 %v741_v3  ;;  %p679_p12 = pnand %p678_p11, %p823_p5  ;;  %s744_s28 = smov [#allocation2]  }
  0x17   : > { %s560_s16 = sshll.u32 %s271_s15, 3  ;;  %s894_s15 = scalar_lea.hbm %s944_s7, %s568_s29 }
  0x18   : > { %s273_s23 = scalar_lea.vmem %s937_s0, %s560_s16  ;;  %s483_s16 = scalar_lea.sflag [#allocation3], %s267_s18 }
  0x19   : > { %v274_v16 = vld [vmem:[%s273_s23] sm:$0xff]  ;;  %629 = vmatpush3.bf16.msra.mxu1 %v628_v17  ;;  %p680_p13 = pneg %p679_p12  ;;  %s681_s19 = sshll.u32 %s744_s28, 4  ;;  %s682_s19 = int_to_ptr.vmem [resolvable:$false] %s681_s19 }
  0x1a   : > { %594 = vmatmul.mubr.msk.f32.vlgmr.msra.gmra.mrb[0].mxu0 %vm286_vm1, %v274_v16  ;;  %630 = vmatprep.subr.bf16.mxu1 %v741_v3  ;;  %s683_s20 = scalar_lea.vmem %s682_s19, 256  ;;  %p684_p0 = scmp.lt.s32.totalorder %s896_s9, %s682_s19 }
  0x1b   : > { %p685_p1 = scmp.lt.s32.totalorder %s683_s20, %s677_s17 }
  0x1d   : > { %632 = vmatpush3.bf16.msra.mxu1 %v631_v20  ;;  %p686_p2 = por %p685_p1, %p684_p0 }
  0x1f   : > { %p687_p3 = pnand %p686_p2, %p680_p13 }
  0xed   : > { %v356_v22 = vpop.f32.mrb[0].mxu0 }
  0xee   : > { %v357_v23 = vadd.f32 %v561_v21, %v356_v22  ;;  %v595_v24 = vpop.f32.mrb[1].mxu0 }
  0xf0   : > { %v360_v25 = vmax.f32 %v357_v23, 0.0 }
  0xf2   : > { %613 = vmatmul.mubr.msk.f32.vlgmr.msra.gmra.mrb[0].mxu1 %vm376_vm2, %v360_v25 }
 0x1c5   : > { %v446_v27 = vpop.f32.mrb[0].mxu1 }
 0x1c6   : > { %v447_v28 = vadd.f32 %v563_v26, %v446_v27  ;;  %v614_v29 = vpop.f32.mrb[1].mxu1 }
 0x1c8   : > { %v450_v30 = vadd.f32 %v447_v28, %v274_v16 }
 0x1ca   : > { %v453_v31 = vsel %vm286_vm1, %v450_v30, 0.0 }
 0x1cb   : > { %454 = vadd.xlane.f32.xlu0 %v453_v31 }
 0x258   : > { %v455_v32 = vpop.xlane.xlu0 %454 }
 0x259   : > { %v457_v33 = vmul.f32 0.03125, %v455_v32 }
 0x25b   : > { %v458_v34 = vsub.f32 %v450_v30, %v457_v33 }
 0x25d   : > { %v459_v35 = vmul.f32 %v458_v34, %v458_v34 }
 0x25f   : > { %v460_v36 = vsel %vm286_vm1, %v459_v35, 0.0 }
 0x260   : > { %461 = vadd.xlane.f32.xlu0 %v460_v36 }
 0x2ed   : > { %v462_v37 = vpop.xlane.xlu0 %461 }
 0x2ee   : > { %v463_v38 = vmul.f32 0.03125, %v462_v37 }
 0x2f0   : > { %v464_v39 = vadd.f32 1e-05, %v463_v38 }
 0x2f2   : > { %675 = vrsqrt.f32 %v464_v39 }
 0x2fc   : > { %v676_v40 = vpop.eup %675 }
 0x2fd   : > { %v466_v42 = vmul.f32 %v676_v40, %v458_v34 }
 0x2ff   : > { %v473_v44 = vmul.f32 %v565_v41, %v466_v42 }
 0x301   : > { %v480_v45 = vadd.f32 %v566_v43, %v473_v44 }
 0x303   : > { %481 = vst.msk [vmem:[%s269_s8] sm:$0xff] %vm286_vm1, %v480_v45 }
 0x304   : > { %690 = shalt.err (!%p687_p3)
}
 0x305   : > { %s691_s18 = scalar_lea.hbm %s894_s15, 128  ;;  %s695_s23 = scalar_lea.hbm %s944_s7, 256 }
 0x306   : > { %p692_p4 = scmp.ne.s32.totalorder %s894_s15, %s691_s18  ;;  %p696_p9 = scmp.lt.u32.totalorder %s894_s15, %s944_s7 }
 0x307   : > { %p697_p10 = scmp.lt.u32.totalorder %s695_s23, %s691_s18  ;;  %p699_p12 = scmp.lt.u32.totalorder %s691_s18, %s894_s15 }
 0x308   : > { %p693_p7 = pnand %p692_p4, %p823_p5 }
 0x309   : > { %p698_p11 = por %p697_p10, %p696_p9 }
 0x30a   : > { %p694_p8 = pneg %p693_p7 }
 0x30b   : > { %p700_p13 = por %p699_p12, %p698_p11 }
 0x30d   : > { %p701_p0 = pnand %p700_p13, %p694_p8 }
 0x30f   : > { %704 = shalt.err (!%p701_p0)
}
 0x310   : > { %633 = dma.vmem_to_hbm [thread:$0]  (%p823_p5), %s896_s9, 128, %s894_s15, %s483_s16  }
 0x311 PF: > { %p639_p1 = scmp.ge.s32.totalorder %s739_s27, 2  ;;  %s508_s13 = sand.u32 1, %s727_s24  }
 0x312   : > { %s509_s14 = scalar_lea.sflag [#allocation3], %s508_s13 }
 0x313   : > { %p636_p2 = pnand %p639_p1, %p827_p6 }
 0x315   : > { %722 = dma.done.wait (!%p636_p2), %s509_s14, 128  }
 0x316   : > { %724 = vsyncadd (!%p636_p2), %s509_s14, 4294967168  ;;  %p17_p3 = scmp.ge.s32.totalorder %s810_s30, 4   ;;  %s947_s24 = smov %s731_s25 }
 0x317   : > { %s948_s25 = smov %s735_s26  ;;  %s949_s26 = smov %s821_s10 }
 0x318   : > { %s950_s27 = smov %s810_s30  ;;  %19 = sbr.rel (!%p17_p3) target bundleno = 3 (0x3), region = 83 }
 0x31f   :  { %514 = vsyncpa [#allocation3], 1 }
 0x320   :  { %516 = vsyncpa [#allocation3 + $0x1], 1 }

// kernel: decoder_layer.3
= control target key start
LH: loop header
LB: loop body
LE: loop exit
PB: predicated region body
PF: predicated region fallthrough
CT: control target
= control target key end

     0   :  { %14 = vsyncpa [#allocation3], 0  ;;  %s1900_s0 = inlined_call_operand.vmem [shape: f32[2,8,32], index: 0, kind: input, shape index: {}, may-alias: {0,1}]   ;;  %s1901_s1 = inlined_call_operand.vmem [shape: f32[2,8,32], index: 1, kind: input, shape index: {}, may-alias: {0,1}]   ;;  %s1902_s2 = inlined_call_operand.vmem [shape: f32[8,8], index: 2, kind: input, shape index: {}]   ;;  %s1903_s3 = inlined_call_operand.vmem [shape: f32[32,96], index: 3, kind: input, shape index: {}]   ;;  %s1904_s4 = inlined_call_operand.vmem [shape: f32[1,96], index: 4, kind: input, shape index: {}]   ;;  %s1905_s5 = inlined_call_operand.vmem [shape: f32[32,32], index: 5, kind: input, shape index: {}]   ;;  %s1906_s6 = inlined_call_operand.vmem [shape: f32[1,32], index: 6, kind: input, shape index: {}]   ;;  %s1907_s7 = inlined_call_operand.hbm [shape: f32[1,32], index: 7, kind: input, shape index: {}]   ;;  %s1908_s8 = inlined_call_operand.hbm [shape: f32[1,32], index: 8, kind: input, shape index: {}]   ;;  %s1909_s9 = inlined_call_operand.vmem [shape: f32[2,8,32], index: 9, kind: output, shape index: {}]  }
   0x1   :  { %15 = vsyncpa [#allocation5], 0  ;;  %s1683_s29 = smov 0  }
   0x2 LB: > { %s1689_s30 = sadd.s32 4294967295, %s1612_s29   ;;  %p1349_p0 = scmp.ge.s32.totalorder %s1612_s29, 1  ;;  %s1612_s29 = sphi %s1683_s29, %s21_s29  }
   0x3   : > { %p251_p1 = scmp.lt.s32.totalorder %s1612_s29, 3  ;;  %p1910_p2 = scmp.eq.s32.totalorder %s1689_s30, 0 }
   0x4   : > { %s1614_s11 = smov [#allocation2]   ;;  %s1615_s13 = smov [#allocation4]  }
   0x5   : > { %p1694_p3 = pnand %p1349_p0, %p251_p1  ;;  %s279_s12 = sshll.u32 %s1614_s11, 4  ;;  %s280_s12 = int_to_ptr.vmem [resolvable:$true] %s279_s12 }
   0x6   : > { %s290_s14 = sshll.u32 %s1615_s13, 4  ;;  %s1542_s18 = scalar_lea.hbm %s1907_s7, 16  ;;  %s1706_s14 = int_to_ptr.vmem [resolvable:$true] %s290_s14 }
   0x7   : > { %s1912_s10 = scalar_select %p1694_p3, 1, 0 }
   0x8   : > { %p1486_p4 = pneg %p1694_p3  ;;  %p1543_p6 = scmp.ne.s32.totalorder %s1907_s7, %s1542_s18 }
   0x9   : > { %p1549_p10 = scmp.lt.u32.totalorder %s1542_s18, %s1907_s7 }
   0xa   : > { %p1702_p5 = pnand %p1910_p2, %p1486_p4 }
   0xc   : > { %p1544_p7 = pneg %p1702_p5 }
   0xe   : > { %p1545_p8 = pnand %p1544_p7, %p1543_p6 }
  0x10   : > { %p1546_p9 = pneg %p1545_p8 }
  0x12   : > { %p1551_p11 = pnand %p1549_p10, %p1546_p9 }
  0x14   : > { %1554 = shalt.err (!%p1551_p11)
}
  0x15   : > { %s1555_s23 = scalar_lea.vmem %s280_s12, 16  ;;  %s1562_s24 = scalar_lea.vmem %s280_s12, 32 }
  0x16   : > { %p1556_p12 = scmp.ne.s32.totalorder %s280_s12, %s1555_s23  ;;  %p1563_p1 = scmp.lt.s32.totalorder %s280_s12, %s280_s12 }
  0x17   : > { %p1564_p4 = scmp.lt.s32.totalorder %s1562_s24, %s1555_s23 }
  0x18   : > { %p1558_p13 = pnand %p1556_p12, %p1544_p7 }
  0x19   : > { %p1565_p2 = por %p1564_p4, %p1563_p1 }
  0x1a   : > { %p1559_p0 = pneg %p1558_p13 }
  0x1c   : > { %p1566_p3 = pnand %p1565_p2, %p1559_p0 }
  0x1e   : > { %1569 = shalt.err (!%p1566_p3)
}
  0x1f   : > { %1489 = dma.hbm_to_vmem [thread:$0]  (!%p1702_p5), %s1907_s7, 16, %s280_s12, [#allocation3]  }
  0x20   : > { %s1570_s28 = scalar_lea.hbm %s1908_s8, 16 }
  0x21   : > { %p1571_p6 = scmp.ne.s32.totalorder %s1908_s8, %s1570_s28  ;;  %p1577_p3 = scmp.lt.u32.totalorder %s1570_s28, %s1908_s8 }
  0x23   : > { %p1573_p8 = pnand %p1571_p6, %p1544_p7 }
  0x25   : > { %p1574_p2 = pneg %p1573_p8 }
  0x27   : > { %p1579_p9 = pnand %p1577_p3, %p1574_p2 }
  0x29   : > { %1582 = shalt.err (!%p1579_p9)
}
  0x2a   : > { %s1583_s12 = scalar_lea.vmem %s1706_s14, 16  ;;  %s1590_s18 = scalar_lea.vmem %s1706_s14, 32 }
  0x2b   : > { %p1584_p10 = scmp.ne.s32.totalorder %s1706_s14, %s1583_s12  ;;  %p1591_p13 = scmp.lt.s32.totalorder %s1706_s14, %s1706_s14 }
  0x2c   : > { %p1592_p0 = scmp.lt.s32.totalorder %s1590_s18, %s1583_s12 }
  0x2d   : > { %p1586_p11 = pnand %p1584_p10, %p1544_p7 }
  0x2e   : > { %p1593_p1 = por %p1592_p0, %p1591_p13 }
  0x2f   : > { %p1587_p12 = pneg %p1586_p11 }
  0x31   : > { %p1594_p4 = pnand %p1593_p1, %p1587_p12 }
  0x33   : > { %1597 = shalt.err (!%p1594_p4)
}
  0x34   : > { %1492 = dma.hbm_to_vmem [thread:$0]  (!%p1702_p5), %s1908_s8, 16, %s1706_s14, [#allocation5]  }
  0x35   : > { %p1914_p6 = scmp.ne.s32.totalorder %s1912_s10, 0 }
  0x36   : > { %p1915_p7 = scmp.eq.s32.totalorder (!%p1914_p6), %s1689_s30, 0 }
  0x37   : > { %317 = sbr.rel (%p1914_p6) target bundleno = 2376 (0x948), region = 56 }
  0x3e   : > { %1603 = dma.done.wait (%p1915_p7), [#allocation3], 16   ;;  %p1916_p8 = pmov %p1915_p7 }
  0x3f   : > { %p1917_p2 = pmov %p1915_p7 }
  0x40   : > { %1605 = vsyncadd (%p1916_p8), [#allocation3], 4294967280 }
  0x41   : > { %1607 = dma.done.wait (%p1917_p2), [#allocation5], 16   ;;  %p1918_p3 = pmov %p1917_p2 }
  0x42   : > { %p359_p9 = scmp.lt.s32.totalorder %s1689_s30, 1  ;;  %v1616_v0 = vmov 0.0|0.0   ;;  %vm1617_vm0 = vmmov 0   ;;  %v1618_v1 = vmov 0.0   ;;  %v373_v2 = vld [vmem:[%s1903_s3] sm:$0xff]  ;;  %v374_v3 = vld [vmem:[%s1903_s3 + $0x8] sm:$0xff] }
  0x43   : > { %1609 = vsyncadd (%p1918_p3), [#allocation5], 4294967280  ;;  %1466 = vmatprep.subr.bf16.mxu0 %v1616_v0  ;;  %1412 = vmatprep.mubr.msk.f32.mxu0 %vm1617_vm0, %v1618_v1  ;;  %v375_v4 = vld [vmem:[%s1903_s3 + $0x10] sm:$0xff]  ;;  %v1467_v5 = vpack.c.bf16 %v374_v3, %v373_v2  ;;  %v376_v6 = vld [vmem:[%s1903_s3 + $0x18] sm:$0xff]  ;;  %vm384_vm1 = vcmask 261120   ;;  %s1619_s16 = smov 64  }
  0x44   : > { %1415 = vmatprep.subr.mxu1 %v1618_v1  ;;  %1417 = vmatprep.mubr.msk.f32.mxu1 %vm1617_vm0, %v1618_v1  ;;  %s1920_s30 = smov (!%p359_p9, %s1689_s30), 1  ;;  %v1470_v7 = vpack.c.bf16 %v376_v6, %v375_v4  ;;  %v1358_v9 = vld [vmem:[%s1904_s4] ss:$0 sm:$0xff]  ;;  %s1620_s17 = smov 96   ;;  %vm461_vm2 = vcmask 64512   ;;  %vm1140_vm4 = vcmask 130048  }
  0x45   : > { %s1356_s26 = sshll.u32 %s1920_s30, 3  ;;  %1468 = vmatpush3.bf16.msra.mxu0 %v1467_v5  ;;  %s1621_s12 = smov 88   ;;  %v372_v18 = vld [vmem:[%s1902_s2] sm:$0xff]  ;;  %vm1142_vm5 = vcmask 195584  }
  0x46   : > { %1469 = vmatprep.subr.bf16.mxu0 %v1616_v0  ;;  %s362_s28 = scalar_lea.vmem %s1900_s0, %s1356_s26  ;;  %s1622_s18 = smov 120   ;;  %vm537_vm3 = vcmp.gt.f32.partialorder %v372_v18, 0.0  ;;  %v1144_v18 = vld [vmem:[%s1905_s5] sm:$0xff] }
  0x47   : > { %v1795_v8 = vld [vmem:[%s362_s28] sm:$0xff]  ;;  %s1623_s19 = smov 80   ;;  %s1624_s14 = smov 72  }
  0x48   : > { %s1625_s15 = smov 112   ;;  %s1626_s21 = smov 104  }
  0x49   : > { %1471 = vmatpush3.bf16.msra.mxu0 %v1470_v7  ;;  %s1627_s22 = smov 56   ;;  %s1628_s23 = smov 48  }
  0x4a   : > { %1435 = vmatprep.subr.mxu0 %v1618_v1  ;;  %s1629_s24 = smov 40  }
  0x4c   : > { %1413 = vmatmul.mubr.msk.f32.vlgmr.msra.gmra.mrb[0].mxu0 %vm384_vm1, %v1795_v8 }
  0x4d   : > { %1437 = vmatprep.mubr.msk.f32.mxu0 %vm1617_vm0, %v1618_v1 }
 0x11f   : > { %v454_v10 = vpop.f32.mrb[0].mxu0 }
 0x120   : > { %v1805_v11 = vadd.f32 %v1358_v9, %v454_v10  ;;  %v1414_v12 = vpop.f32.mrb[1].mxu0 }
 0x122   : > { %550 = vrot.lane.b32.xlu1 %v1805_v11, %s1619_s16  ;;  %459 = vrot.lane.b32.xlu0 %v1805_v11, %s1620_s17 }
 0x126   : > { %628 = vrot.lane.b32.xlu1 %v1805_v11, %s1621_s12  ;;  %s1630_s12 = smov 8  }
 0x12a   : > { %626 = vrot.lane.b32.xlu1 %v1805_v11, %s1622_s18  ;;  %s1631_s18 = smov 16  }
 0x12e   : > { %795 = vrot.lane.b32.xlu1 %v1805_v11, %s1623_s19  ;;  %s1632_s19 = smov 24  }
 0x194   : > { %v551_v13 = vpop.permute.xlu1 %550  ;;  %v460_v14 = vpop.permute.xlu0 %459 }
 0x195   : > { %1416 = vmatpush3.xpose.msk.msra.mxu1 %vm461_vm2, %v460_v14 }
 0x196   : > { %1420 = vmatprep.subr.mxu1 %v1618_v1 }
 0x198   : > { %v629_v15 = vpop.permute.xlu1 %628  ;;  %1418 = vmatmul.mubr.msk.f32.vlgmr.msra.gmra.mrb[0].mxu1 %vm461_vm2, %v1805_v11 }
 0x199   : > { %1421 = vmatpush3.msra.mxu1 %v551_v13  ;;  %1422 = vmatprep.mubr.msk.f32.mxu1 %vm1617_vm0, %v1618_v1 }
 0x19a   : > { %1425 = vmatprep.subr.mxu1 %v1618_v1 }
 0x19c   : > { %v627_v16 = vpop.permute.xlu1 %626 }
 0x1a0   : > { %v796_v17 = vpop.permute.xlu1 %795 }
 0x1a1   : > { %1436 = vmatpush3.xpose.msk.msra.mxu0 %vm461_vm2, %v796_v17 }
 0x1a2   : > { %1445 = vmatprep.subr.mxu0 %v1618_v1 }
 0x26b   : > { %v532_v19 = vpop.f32.mrb[0].mxu1 }
 0x26c   : > { %v536_v20 = vmul.f32 0.35355338, %v532_v19  ;;  %v1419_v21 = vpop.f32.mrb[1].mxu1  ;;  %v1145_v19 = vld [vmem:[%s1905_s5 + $0x8] sm:$0xff] }
 0x26d   : > { %v1146_v21 = vld [vmem:[%s1905_s5 + $0x10] sm:$0xff] }
 0x26e   : > { %v538_v22 = vsel %vm537_vm3, %v536_v20, -1e+09  ;;  %v1473_v20 = vpack.c.bf16 %v1145_v19, %v1144_v18 }
 0x26f   : > { %v539_v23 = vsel %vm461_vm2, %v538_v22, -inf }
 0x270   : > { %540 = vmax.xlane.f32.xlu0 %v539_v23 }
 0x286   : > { %962 = vrot.lane.b32.xlu0 %v1805_v11, %s1624_s14 }
 0x2fd   : > { %v541_v24 = vpop.xlane.xlu0 %540 }
 0x2fe   : > { %v542_v25 = vsub.f32 %v538_v22, %v541_v24 }
 0x300   : > { %v543_v26 = vmul.f32 1.442695, %v542_v25 }
 0x301   : > { %v963_v31 = vpop.permute.xlu0 %962 }
 0x302   : > { %1524 = vpow2.f32 %v543_v26 }
 0x30c   : > { %v1525_v27 = vpop.eup %1524 }
 0x30d   : > { %v545_v28 = vsel %vm461_vm2, %v1525_v27, 0.0 }
 0x30e   : > { %546 = vadd.xlane.f32.xlu1 %v545_v28 }
 0x31f   : > { %793 = vrot.lane.b32.xlu1 %v1805_v11, %s1625_s15 }
 0x323   : > { %960 = vrot.lane.b32.xlu1 %v1805_v11, %s1626_s21  ;;  %s370_s21 = scalar_lea.vmem %s1909_s9, %s1356_s26 }
 0x39b   : > { %v547_v29 = vpop.xlane.xlu1 %546 }
 0x39c   : > { %1526 = vrcp.f32 %v547_v29 }
 0x39f   : > { %v794_v30 = vpop.permute.xlu1 %793 }
 0x3a0   : > { %1438 = vmatmul.mubr.msk.f32.vlgmr.msra.gmra.mrb[2].mxu0 %vm461_vm2, %v794_v30 }
 0x3a1   : > { %1446 = vmatpush3.xpose.msk.msra.mxu0 %vm461_vm2, %v963_v31  ;;  %1447 = vmatprep.mubr.msk.f32.mxu0 %vm1617_vm0, %v1618_v1 }
 0x3a2   : > { %1472 = vmatprep.subr.bf16.mxu0 %v1616_v0 }
 0x3a3   : > { %v961_v32 = vpop.permute.xlu1 %960 }
 0x3a4   : > { %1448 = vmatmul.mubr.msk.f32.vlgmr.msra.gmra.mrb[4].mxu0 %vm461_vm2, %v961_v32 }
 0x3a5   : > { %1463 = vmatprep.mubr.msk.f32.mxu0 %vm1617_vm0, %v1618_v1  ;;  %1474 = vmatpush3.bf16.msra.mxu0 %v1473_v20 }
 0x3a6   : > { %v1527_v33 = vpop.eup %1526  ;;  %1475 = vmatprep.subr.bf16.mxu0 %v1616_v0 }
 0x3a7   : > { %v549_v34 = vmul.f32 %v1527_v33, %v1525_v27 }
 0x3a9   : > { %1423 = vmatmul.mubr.msk.f32.vlgmr.msra.gmra.mrb[2].mxu1 %vm461_vm2, %v549_v34  ;;  %v1372_v34 = vld [vmem:[%s1906_s6] ss:$0 sm:$0xff] }
 0x3aa   : > { %1426 = vmatpush3.xpose.msk.msra.mxu1 %vm461_vm2, %v629_v15  ;;  %1427 = vmatprep.mubr.msk.f32.mxu1 %vm1617_vm0, %v1618_v1 }
 0x3ab   : > { %1430 = vmatprep.subr.mxu1 %v1618_v1 }
 0x3ad   : > { %1428 = vmatmul.mubr.msk.f32.vlgmr.msra.gmra.mrb[4].mxu1 %vm461_vm2, %v627_v16 }
 0x3ae   : > { %1432 = vmatprep.mubr.msk.f32.mxu1 %vm1617_vm0, %v1618_v1 }
 0x473   : > { %v867_v35 = vpop.f32.mrb[2].mxu0 }
 0x474   : > { %v871_v36 = vmul.f32 0.35355338, %v867_v35  ;;  %v1439_v37 = vpop.f32.mrb[3].mxu0 }
 0x476   : > { %v872_v38 = vsel %vm537_vm3, %v871_v36, -1e+09 }
 0x477   : > { %v1034_v39 = vpop.f32.mrb[4].mxu0  ;;  %v873_v40 = vsel %vm461_vm2, %v872_v38, -inf }
 0x478   : > { %874 = vmax.xlane.f32.xlu0 %v873_v40  ;;  %v1449_v41 = vpop.f32.mrb[5].mxu0  ;;  %v1038_v45 = vmul.f32 0.35355338, %v1034_v39 }
 0x47a   : > { %v1039_v50 = vsel %vm537_vm3, %v1038_v45, -1e+09 }
 0x47b   : > { %v1040_v51 = vsel %vm461_vm2, %v1039_v50, -inf }
 0x47c   : > { %v1848_v42 = vpop.f32.mrb[2].mxu1 }
 0x47d   : > { %v1424_v43 = vpop.f32.mrb[3].mxu1 }
 0x480   : > { %v700_v44 = vpop.f32.mrb[4].mxu1 }
 0x481   : > { %v704_v46 = vmul.f32 0.35355338, %v700_v44  ;;  %v1429_v47 = vpop.f32.mrb[5].mxu1 }
 0x483   : > { %v705_v48 = vsel %vm537_vm3, %v704_v46, -1e+09 }
 0x484   : > { %v706_v49 = vsel %vm461_vm2, %v705_v48, -inf }
 0x485   : > { %707 = vmax.xlane.f32.xlu1 %v706_v49  ;;  %v1374_v49 = vld [vmem:[#allocation2] ss:$0 sm:$0xff] }
 0x489   : > { %1041 = vmax.xlane.f32.xlu1 %v1040_v51  ;;  %v1375_v51 = vld [vmem:[#allocation4] ss:$0 sm:$0xff] }
 0x505   : > { %v875_v52 = vpop.xlane.xlu0 %874 }
 0x506   : > { %v876_v53 = vsub.f32 %v872_v38, %v875_v52 }
 0x508   : > { %v877_v54 = vmul.f32 1.442695, %v876_v53 }
 0x50a   : > { %1528 = vpow2.f32 %v877_v54 }
 0x512   : > { %v708_v55 = vpop.xlane.xlu1 %707 }
 0x513   : > { %v709_v63 = vsub.f32 %v705_v48, %v708_v55 }
 0x514   : > { %v1529_v56 = vpop.eup %1528 }
 0x515   : > { %v879_v57 = vsel %vm461_vm2, %v1529_v56, 0.0  ;;  %v710_v2 = vmul.f32 1.442695, %v709_v63 }
 0x516   : > { %880 = vadd.xlane.f32.xlu1 %v879_v57  ;;  %v1042_v58 = vpop.xlane.xlu1 %1041 }
 0x517   : > { %v1043_v59 = vsub.f32 %v1039_v50, %v1042_v58 }
 0x519   : > { %v1044_v60 = vmul.f32 1.442695, %v1043_v59 }
 0x51b   : > { %1530 = vpow2.f32 %v1044_v60 }
 0x51c   : > { %1532 = vpow2.f32 %v710_v2 }
 0x525   : > { %v1531_v61 = vpop.eup %1530 }
 0x526   : > { %v1046_v62 = vsel %vm461_vm2, %v1531_v61, 0.0  ;;  %v1533_v3 = vpop.eup %1532 }
 0x527   : > { %717 = vrot.lane.b32.xlu1 %v1805_v11, %s1627_s22  ;;  %1047 = vadd.xlane.f32.xlu0 %v1046_v62  ;;  %v712_v4 = vsel %vm461_vm2, %v1533_v3, 0.0 }
 0x53d   : > { %884 = vrot.lane.b32.xlu0 %v1805_v11, %s1628_s23 }
 0x54b   : > { %713 = vadd.xlane.f32.xlu1 %v712_v4 }
 0x55c   : > { %1051 = vrot.lane.b32.xlu1 %v1805_v11, %s1629_s24 }
 0x5a3   : > { %v881_v5 = vpop.xlane.xlu1 %880 }
 0x5a7   : > { %v718_v6 = vpop.permute.xlu1 %717 }
 0x5a8   : > { %1431 = vmatpush3.msra.mxu1 %v718_v6 }
 0x5a9   : > { %1440 = vmatprep.subr.mxu1 %v1618_v1 }
 0x5b4   : > { %v1048_v9 = vpop.xlane.xlu0 %1047 }
 0x5b8   : > { %v885_v14 = vpop.permute.xlu0 %884 }
 0x5d8   : > { %v714_v7 = vpop.xlane.xlu1 %713 }
 0x5d9   : > { %1534 = vrcp.f32 %v714_v7 }
 0x5da   : > { %1536 = vrcp.f32 %v881_v5 }
 0x5db   : > { %1538 = vrcp.f32 %v1048_v9 }
 0x5dc   : > { %v1052_v16 = vpop.permute.xlu1 %1051 }
 0x5e3   : > { %v1535_v10 = vpop.eup %1534 }
 0x5e4   : > { %v716_v12 = vmul.f32 %v1535_v10, %v1533_v3  ;;  %v1537_v13 = vpop.eup %1536 }
 0x5e5   : > { %v883_v11 = vmul.f32 %v1537_v13, %v1529_v56  ;;  %v1539_v15 = vpop.eup %1538 }
 0x5e6   : > { %1433 = vmatmul.mubr.msk.f32.vlgmr.msra.gmra.mrb[6].mxu1 %vm461_vm2, %v716_v12  ;;  %v1050_v17 = vmul.f32 %v1539_v15, %v1531_v61 }
 0x5e7   : > { %1441 = vmatpush3.msra.mxu1 %v885_v14  ;;  %1442 = vmatprep.mubr.msk.f32.mxu1 %vm1617_vm0, %v1618_v1 }
 0x5e8   : > { %1450 = vmatprep.subr.mxu1 %v1618_v1 }
 0x5ea   : > { %1443 = vmatmul.mubr.msk.f32.vlgmr.msra.gmra.mrb[8].mxu1 %vm461_vm2, %v883_v11 }
 0x5eb   : > { %1451 = vmatpush3.msra.mxu1 %v1052_v16  ;;  %1452 = vmatprep.mubr.msk.f32.mxu1 %vm1617_vm0, %v1618_v1  ;;  %v1147_v1 = vld [vmem:[%s1905_s5 + $0x18] sm:$0xff] }
 0x5ec   : > { %v1476_v22 = vpack.c.bf16 %v1147_v1, %v1146_v21 }
 0x5ee   : > { %1453 = vmatmul.mubr.msk.f32.vlgmr.msra.gmra.mrb[10].mxu1 %vm461_vm2, %v1050_v17  ;;  %1477 = vmatpush3.bf16.msra.mxu0 %v1476_v22 }
 0x6b9   : > { %v789_v23 = vpop.f32.mrb[6].mxu1 }
 0x6ba   : > { %1128 = vrot.lane.b32.xlu1 %v789_v23, %s1630_s12  ;;  %v1434_v24 = vpop.f32.mrb[7].mxu1 }
 0x6bd   : > { %v956_v25 = vpop.f32.mrb[8].mxu1 }
 0x6be   : > { %1132 = vrot.lane.b32.xlu0 %v956_v25, %s1631_s18  ;;  %v1444_v26 = vpop.f32.mrb[9].mxu1 }
 0x6c1   : > { %v1123_v27 = vpop.f32.mrb[10].mxu1 }
 0x6c2   : > { %1136 = vrot.lane.b32.xlu1 %v1123_v27, %s1632_s19  ;;  %v1454_v0 = vpop.f32.mrb[11].mxu1 }
 0x72c   : > { %v1129_v28 = vpop.permute.xlu1 %1128 }
 0x72d   : > { %v1139_v30 = vsel %vm461_vm2, %v1848_v42, %v1129_v28 }
 0x730   : > { %v1133_v29 = vpop.permute.xlu0 %1132 }
 0x731   : > { %v1141_v31 = vsel %vm1140_vm4, %v1139_v30, %v1133_v29 }
 0x734   : > { %v1137_v32 = vpop.permute.xlu1 %1136 }
 0x735   : > { %v1143_v33 = vsel %vm1142_vm5, %v1141_v31, %v1137_v32 }
 0x736   : > { %1464 = vmatmul.mubr.msk.f32.vlgmr.msra.gmra.mrb[6].mxu0 %vm384_vm1, %v1143_v33 }
 0x809   : > { %v1224_v35 = vpop.f32.mrb[6].mxu0 }
 0x80a   : > { %v1225_v36 = vadd.f32 %v1372_v34, %v1224_v35  ;;  %v1465_v37 = vpop.f32.mrb[7].mxu0 }
 0x80c   : > { %v1228_v38 = vadd.f32 %v1225_v36, %v1795_v8 }
 0x80e   : > { %v1231_v39 = vsel %vm384_vm1, %v1228_v38, 0.0 }
 0x80f   : > { %1232 = vadd.xlane.f32.xlu0 %v1231_v39 }
 0x89c   : > { %v1233_v40 = vpop.xlane.xlu0 %1232 }
 0x89d   : > { %v1235_v41 = vmul.f32 0.03125, %v1233_v40 }
 0x89f   : > { %v1236_v42 = vsub.f32 %v1228_v38, %v1235_v41 }
 0x8a1   : > { %v1237_v43 = vmul.f32 %v1236_v42, %v1236_v42 }
 0x8a3   : > { %v1238_v44 = vsel %vm384_vm1, %v1237_v43, 0.0 }
 0x8a4   : > { %1239 = vadd.xlane.f32.xlu1 %v1238_v44 }
 0x931   : > { %v1240_v45 = vpop.xlane.xlu1 %1239 }
 0x932   : > { %v1241_v46 = vmul.f32 0.03125, %v1240_v45 }
 0x934   : > { %v1242_v47 = vadd.f32 1e-05, %v1241_v46 }
 0x936   : > { %1540 = vrsqrt.f32 %v1242_v47 }
 0x940   : > { %v1541_v48 = vpop.eup %1540 }
 0x941   : > { %v1244_v50 = vmul.f32 %v1541_v48, %v1236_v42 }
 0x943   : > { %v1251_v8 = vmul.f32 %v1374_v49, %v1244_v50 }
 0x945   : > { %v1258_v52 = vadd.f32 %v1375_v51, %v1251_v8 }
 0x947   : > { %1259 = vst.msk [vmem:[%s370_s21] sm:$0xff] %vm384_vm1, %v1258_v52 }
 0x948 PF: > { %s21_s29 = sadd.s32 1, %s1612_s29  }
 0x949   : > { %p18_p5 = scmp.ge.s32.totalorder %s21_s29, 4  }
 0x94b   :  { %20 = sbr.rel (!%p18_p5) target bundleno = 2 (0x2), region = 98 }
 0x952   :  { %1279 = vsyncpa [#allocation3], 1 }
 0x953   :  { %1281 = vsyncpa [#allocation3 + $0x1], 1 }
 0x954   :  { %1282 = vsyncpa [#allocation5], 1 }

// kernel: decoder_layer.4
= control target key start
LH: loop header
LB: loop body
LE: loop exit
PB: predicated region body
PF: predicated region fallthrough
CT: control target
= control target key end

     0   :  { %s1662_s30 = smov 0   ;;  %s1811_s0 = inlined_call_operand.vmem [shape: f32[2,8,32], index: 0, kind: input, shape index: {}]   ;;  %s1812_s1 = inlined_call_operand.vmem [shape: f32[2,8,32], index: 1, kind: input, shape index: {}]   ;;  %s1813_s2 = inlined_call_operand.vmem [shape: f32[8,8], index: 2, kind: input, shape index: {}]   ;;  %s1814_s3 = inlined_call_operand.vmem [shape: f32[32,96], index: 3, kind: input, shape index: {}]   ;;  %s1815_s4 = inlined_call_operand.vmem [shape: f32[1,96], index: 4, kind: input, shape index: {}]   ;;  %s1816_s5 = inlined_call_operand.vmem [shape: f32[32,32], index: 5, kind: input, shape index: {}]   ;;  %s1817_s6 = inlined_call_operand.vmem [shape: f32[1,32], index: 6, kind: input, shape index: {}]   ;;  %s1818_s7 = inlined_call_operand.vmem [shape: f32[1,32], index: 7, kind: input, shape index: {}]   ;;  %s1819_s8 = inlined_call_operand.vmem [shape: f32[1,32], index: 8, kind: input, shape index: {}]   ;;  %s1820_s9 = inlined_call_operand.vmem [shape: f32[2,8,32], index: 9, kind: output, shape index: {}]  }
   0x1 LB: > { %s1391_s10 = sadd.s32 4294967295, %s1597_s30   ;;  %p1395_p0 = scmp.ge.s32.totalorder %s1597_s30, 1  ;;  %s1597_s30 = sphi %s1662_s30, %s19_s30  }
   0x2   : > { %p295_p1 = scmp.lt.s32.totalorder %s1597_s30, 3 }
   0x4   : > { %p296_p2 = pnand %p1395_p0, %p295_p1 }
   0x5   : > { %v348_v0 = vld [vmem:[%s1814_s3] sm:$0xff] (!%p296_p2)  ;;  %v349_v1 = vld [vmem:[%s1814_s3 + $0x8] sm:$0xff] (!%p296_p2)  ;;  %v350_v2 = vld [vmem:[%s1814_s3 + $0x10] sm:$0xff] (!%p296_p2)  ;;  %v1599_v5 = vmov (!%p296_p2), 0.0|0.0   ;;  %p333_p3 = scmp.lt.s32.totalorder (!%p296_p2), %s1391_s10, 1  ;;  %vm1600_vm0 = vmmov (!%p296_p2), 0  }
   0x6   : > { %299 = sbr.rel (%p296_p2) target bundleno = 1861 (0x745), region = 56  ;;  %v1563_v3 = vpack.i.bf16 (!%p296_p2), %v349_v1, %v348_v0  ;;  %v351_v4 = vld [vmem:[%s1814_s3 + $0x18] sm:$0xff] (!%p296_p2)  ;;  %1524 = vmatprep.subr.bf16.mxu0 (!%p296_p2), %v1599_v5  ;;  %v1525_v6 = vpack.c.bf16 (!%p296_p2), %v349_v1, %v348_v0  ;;  %1530 = vmatprep.subr.bf16.mxu1 (!%p296_p2), %v1599_v5  ;;  %v1399_v7 = vld [vmem:[%s1815_s4] ss:$0 sm:$0xff] (!%p296_p2)  ;;  %v1601_v8 = vmov (!%p296_p2), 0.0   ;;  %s1602_s21 = smov (!%p296_p2), 96  }
   0x7   : > { %1459 = vmatprep.mubr.msk.f32.mxu0 (!%p296_p2), %vm1600_vm0, %v1601_v8  ;;  %1470 = vmatprep.mubr.msk.f32.mxu1 (!%p296_p2), %vm1600_vm0, %v1601_v8  ;;  %v1568_v9 = vpack.i.bf16 (!%p296_p2), %v351_v4, %v350_v2  ;;  %v1528_v10 = vpack.c.bf16 (!%p296_p2), %v351_v4, %v350_v2  ;;  %vm359_vm1 = vcmask (!%p296_p2), 261120   ;;  %s1603_s29 = smov (!%p296_p2), 120   ;;  %s1605_s11 = smov (!%p296_p2), 104   ;;  %vm525_vm2 = vcmask (!%p296_p2), 64512   ;;  %v347_v34 = vld [vmem:[%s1813_s2] sm:$0xff] (!%p296_p2) }
   0x8   : > { %1564 = vrot.lane.b32.xlu0 (!%p296_p2), %v1563_v3, %s1602_s21  ;;  %1526 = vmatpush3.bf16.msra.mxu0 (!%p296_p2), %v1525_v6  ;;  %vm603_vm3 = vcmp.gt.f32.partialorder (!%p296_p2), %v347_v34, 0.0  ;;  %s1606_s14 = smov (!%p296_p2), 88   ;;  %s1607_s15 = smov (!%p296_p2), 80   ;;  %vm1206_vm4 = vcmask (!%p296_p2), 130048   ;;  %vm1208_vm5 = vcmask (!%p296_p2), 195584  }
   0x9   : > { %1527 = vmatprep.subr.bf16.mxu0 (!%p296_p2), %v1599_v5  ;;  %449 = vrot.lane.b32.xlu1 (!%p296_p2), %v1399_v7, %s1602_s21  ;;  %s1608_s16 = smov (!%p296_p2), 72   ;;  %s1609_s26 = smov (!%p296_p2), 8  }
   0xa   : > { %s1610_s27 = smov (!%p296_p2), 16  }
   0xc   : > { %1569 = vrot.lane.b32.xlu0 (!%p296_p2), %v1568_v9, %s1602_s21  ;;  %1529 = vmatpush3.bf16.msra.mxu0 (!%p296_p2), %v1528_v10 }
   0xd   : > { %s1822_s10 = smov (!%p333_p3, %s1391_s10), 1  ;;  %1483 = vmatprep.subr.mxu0 %v1601_v8 }
   0xe   : > { %s1694_s22 = sshll.u32 %s1822_s10, 3  ;;  %s1604_s10 = smov 112  }
   0xf   : > { %s336_s25 = scalar_lea.vmem %s1811_s0, %s1694_s22  ;;  %s340_s28 = scalar_lea.vmem %s1812_s1, %s1694_s22 }
  0x10   : > { %v1701_v11 = vld [vmem:[%s336_s25] sm:$0xff]  ;;  %s344_s17 = scalar_lea.vmem %s1820_s9, %s1694_s22 }
  0x11   : > { %1460 = vmatmul.mubr.msk.f32.vlgmr.msra.gmra.mrb[0].mxu0 %vm359_vm1, %v1701_v11  ;;  %v346_v20 = vld [vmem:[%s340_s28] sm:$0xff]  ;;  %s1611_s28 = smov 24  }
  0x12   : > { %1485 = vmatprep.mubr.msk.f32.mxu0 %vm1600_vm0, %v1601_v8 }
  0x7a   : > { %v1565_v12 = vpop.permute.xlu0 %1564 }
  0x7b   : > { %v1567_v13 = vunpack.i.h.bf16 %v1565_v12  ;;  %v1566_v14 = vunpack.i.l.bf16 %v1565_v12  ;;  %v450_v24 = vpop.permute.xlu1 %449 }
  0x7d   : > { %v1531_v15 = vpack.c.bf16 %v1567_v13, %v1566_v14 }
  0x7e   : > { %v1570_v16 = vpop.permute.xlu0 %1569 }
  0x7f   : > { %v1572_v17 = vunpack.i.h.bf16 %v1570_v16  ;;  %v1571_v18 = vunpack.i.l.bf16 %v1570_v16  ;;  %1532 = vmatpush3.bf16.msra.mxu1 %v1531_v15 }
  0x80   : > { %1533 = vmatprep.subr.bf16.mxu1 %v1599_v5 }
  0x81   : > { %v1534_v19 = vpack.c.bf16 %v1572_v17, %v1571_v18 }
  0x83   : > { %1535 = vmatpush3.bf16.msra.mxu1 %v1534_v19 }
  0x84   : > { %1473 = vmatprep.subr.mxu1 %v1601_v8 }
  0x86   : > { %1471 = vmatmul.mubr.msk.f32.vlgmr.msra.gmra.mrb[0].mxu1 %vm359_vm1, %v346_v20 }
  0x87   : > { %1475 = vmatprep.mubr.msk.f32.mxu1 %vm1600_vm0, %v1601_v8 }
  0xe4   : > { %v429_v21 = vpop.f32.mrb[0].mxu0 }
  0xe5   : > { %v430_v22 = vadd.f32 %v1399_v7, %v429_v21  ;;  %v1461_v23 = vpop.f32.mrb[1].mxu0 }
  0xe7   : > { %692 = vrot.lane.b32.xlu0 %v430_v22, %s1603_s29 }
  0xeb   : > { %859 = vrot.lane.b32.xlu0 %v430_v22, %s1604_s10 }
  0xef   : > { %1026 = vrot.lane.b32.xlu0 %v430_v22, %s1605_s11 }
 0x159   : > { %v521_v25 = vpop.f32.mrb[0].mxu1  ;;  %v693_v28 = vpop.permute.xlu0 %692 }
 0x15a   : > { %v1717_v26 = vadd.f32 %v521_v25, %v450_v24  ;;  %v1472_v27 = vpop.f32.mrb[1].mxu1 }
 0x15c   : > { %694 = vrot.lane.b32.xlu1 %v1717_v26, %s1603_s29  ;;  %1474 = vmatpush3.xpose.msk.msra.mxu1 %vm525_vm2, %v1717_v26 }
 0x15d   : > { %1478 = vmatprep.subr.mxu1 %v1601_v8  ;;  %v860_v31 = vpop.permute.xlu0 %859 }
 0x15f   : > { %1476 = vmatmul.mubr.msk.f32.vlgmr.msra.gmra.mrb[2].mxu1 %vm525_vm2, %v430_v22 }
 0x160   : > { %861 = vrot.lane.b32.xlu1 %v1717_v26, %s1604_s10  ;;  %1480 = vmatprep.mubr.msk.f32.mxu1 %vm1600_vm0, %v1601_v8 }
 0x161   : > { %v1027_v33 = vpop.permute.xlu0 %1026 }
 0x164   : > { %1028 = vrot.lane.b32.xlu1 %v1717_v26, %s1605_s11 }
 0x1ce   : > { %v695_v29 = vpop.permute.xlu1 %694 }
 0x1cf   : > { %1484 = vmatpush3.xpose.msk.msra.mxu0 %vm525_vm2, %v695_v29 }
 0x1d0   : > { %1493 = vmatprep.subr.mxu0 %v1601_v8 }
 0x1d2   : > { %v862_v30 = vpop.permute.xlu1 %861  ;;  %1486 = vmatmul.mubr.msk.f32.vlgmr.msra.gmra.mrb[2].mxu0 %vm525_vm2, %v693_v28 }
 0x1d3   : > { %1494 = vmatpush3.xpose.msk.msra.mxu0 %vm525_vm2, %v862_v30  ;;  %1495 = vmatprep.mubr.msk.f32.mxu0 %vm1600_vm0, %v1601_v8 }
 0x1d4   : > { %1503 = vmatprep.subr.mxu0 %v1601_v8 }
 0x1d6   : > { %v1029_v32 = vpop.permute.xlu1 %1028  ;;  %1496 = vmatmul.mubr.msk.f32.vlgmr.msra.gmra.mrb[4].mxu0 %vm525_vm2, %v860_v31 }
 0x1d7   : > { %1504 = vmatpush3.xpose.msk.msra.mxu0 %vm525_vm2, %v1029_v32  ;;  %1505 = vmatprep.mubr.msk.f32.mxu0 %vm1600_vm0, %v1601_v8  ;;  %v1210_v32 = vld [vmem:[%s1816_s5] sm:$0xff] }
 0x1d8   : > { %1536 = vmatprep.subr.bf16.mxu0 %v1599_v5 }
 0x1da   : > { %1506 = vmatmul.mubr.msk.f32.vlgmr.msra.gmra.mrb[6].mxu0 %vm525_vm2, %v1027_v33  ;;  %v1211_v33 = vld [vmem:[%s1816_s5 + $0x8] sm:$0xff] }
 0x1db   : > { %1521 = vmatprep.mubr.msk.f32.mxu0 %vm1600_vm0, %v1601_v8  ;;  %v1537_v34 = vpack.c.bf16 %v1211_v33, %v1210_v32 }
 0x1dd   : > { %1538 = vmatpush3.bf16.msra.mxu0 %v1537_v34 }
 0x1de   : > { %1539 = vmatprep.subr.bf16.mxu0 %v1599_v5 }
 0x232   : > { %v598_v35 = vpop.f32.mrb[2].mxu1 }
 0x233   : > { %v602_v36 = vmul.f32 0.35355338, %v598_v35  ;;  %v1477_v37 = vpop.f32.mrb[3].mxu1  ;;  %v1213_v35 = vld [vmem:[%s1816_s5 + $0x18] sm:$0xff] }
 0x235   : > { %v604_v38 = vsel %vm603_vm3, %v602_v36, -1e+09 }
 0x236   : > { %v605_v39 = vsel %vm525_vm2, %v604_v38, -inf }
 0x237   : > { %606 = vmax.xlane.f32.xlu1 %v605_v39 }
 0x2a5   : > { %v766_v40 = vpop.f32.mrb[2].mxu0 }
 0x2a6   : > { %v770_v41 = vmul.f32 0.35355338, %v766_v40  ;;  %v1487_v42 = vpop.f32.mrb[3].mxu0 }
 0x2a8   : > { %v771_v43 = vsel %vm603_vm3, %v770_v41, -1e+09 }
 0x2a9   : > { %v933_v44 = vpop.f32.mrb[4].mxu0  ;;  %v772_v45 = vsel %vm525_vm2, %v771_v43, -inf }
 0x2aa   : > { %v937_v46 = vmul.f32 0.35355338, %v933_v44  ;;  %773 = vmax.xlane.f32.xlu0 %v772_v45  ;;  %v1497_v47 = vpop.f32.mrb[5].mxu0 }
 0x2ac   : > { %v938_v48 = vsel %vm603_vm3, %v937_v46, -1e+09 }
 0x2ad   : > { %v1100_v49 = vpop.f32.mrb[6].mxu0  ;;  %v939_v50 = vsel %vm525_vm2, %v938_v48, -inf }
 0x2ae   : > { %v1104_v51 = vmul.f32 0.35355338, %v1100_v49  ;;  %940 = vmax.xlane.f32.xlu0 %v939_v50  ;;  %v1507_v52 = vpop.f32.mrb[7].mxu0 }
 0x2b0   : > { %v1105_v53 = vsel %vm603_vm3, %v1104_v51, -1e+09 }
 0x2b1   : > { %v1106_v54 = vsel %vm525_vm2, %v1105_v53, -inf }
 0x2b2   : > { %1107 = vmax.xlane.f32.xlu1 %v1106_v54 }
 0x2c3   : > { %783 = vrot.lane.b32.xlu1 %v1717_v26, %s1606_s14 }
 0x2c4   : > { %v607_v55 = vpop.xlane.xlu1 %606 }
 0x2c5   : > { %v608_v56 = vsub.f32 %v604_v38, %v607_v55 }
 0x2c7   : > { %v609_v57 = vmul.f32 1.442695, %v608_v56 }
 0x2c9   : > { %1573 = vpow2.f32 %v609_v57 }
 0x2d3   : > { %v1574_v58 = vpop.eup %1573 }
 0x2d4   : > { %v611_v59 = vsel %vm525_vm2, %v1574_v58, 0.0 }
 0x2d5   : > { %612 = vadd.xlane.f32.xlu0 %v611_v59 }
 0x2eb   : > { %616 = vrot.lane.b32.xlu0 %v1717_v26, %s1602_s21 }
 0x337   : > { %v774_v60 = vpop.xlane.xlu0 %773 }
 0x338   : > { %v775_v61 = vsub.f32 %v771_v43, %v774_v60 }
 0x33a   : > { %v776_v62 = vmul.f32 1.442695, %v775_v61 }
 0x33b   : > { %v941_v63 = vpop.xlane.xlu0 %940 }
 0x33c   : > { %1575 = vpow2.f32 %v776_v62  ;;  %v942_v0 = vsub.f32 %v938_v48, %v941_v63  ;;  %v1414_v48 = vld [vmem:[%s1817_s6] ss:$0 sm:$0xff] }
 0x33e   : > { %v943_v1 = vmul.f32 1.442695, %v942_v0  ;;  %v1417_v0 = vld [vmem:[%s1819_s8] ss:$0 sm:$0xff] }
 0x33f   : > { %v1108_v2 = vpop.xlane.xlu1 %1107 }
 0x340   : > { %1577 = vpow2.f32 %v943_v1  ;;  %v1109_v3 = vsub.f32 %v1105_v53, %v1108_v2 }
 0x342   : > { %v1110_v4 = vmul.f32 1.442695, %v1109_v3 }
 0x343   : > { %v784_v18 = vpop.permute.xlu1 %783 }
 0x344   : > { %1579 = vpow2.f32 %v1110_v4 }
 0x346   : > { %v1576_v6 = vpop.eup %1575 }
 0x347   : > { %v778_v7 = vsel %vm525_vm2, %v1576_v6, 0.0 }
 0x348   : > { %779 = vadd.xlane.f32.xlu1 %v778_v7 }
 0x34a   : > { %v1578_v9 = vpop.eup %1577 }
 0x34b   : > { %v945_v10 = vsel %vm525_vm2, %v1578_v9, 0.0 }
 0x34c   : > { %946 = vadd.xlane.f32.xlu0 %v945_v10 }
 0x34e   : > { %v1580_v12 = vpop.eup %1579 }
 0x34f   : > { %v1112_v13 = vsel %vm525_vm2, %v1580_v12, 0.0 }
 0x350   : > { %1113 = vadd.xlane.f32.xlu1 %v1112_v13 }
 0x361   : > { %950 = vrot.lane.b32.xlu1 %v1717_v26, %s1607_s15 }
 0x362   : > { %1117 = vrot.lane.b32.xlu0 %v1717_v26, %s1608_s16  ;;  %v613_v14 = vpop.xlane.xlu0 %612 }
 0x363   : > { %1581 = vrcp.f32 %v613_v14 }
 0x366   : > { %v617_v15 = vpop.permute.xlu0 %616 }
 0x367   : > { %1479 = vmatpush3.msra.mxu1 %v617_v15 }
 0x368   : > { %1488 = vmatprep.subr.mxu1 %v1601_v8 }
 0x36d   : > { %v1582_v16 = vpop.eup %1581 }
 0x36e   : > { %v615_v17 = vmul.f32 %v1582_v16, %v1574_v58 }
 0x370   : > { %1481 = vmatmul.mubr.msk.f32.vlgmr.msra.gmra.mrb[4].mxu1 %vm525_vm2, %v615_v17 }
 0x371   : > { %1489 = vmatpush3.msra.mxu1 %v784_v18  ;;  %1490 = vmatprep.mubr.msk.f32.mxu1 %vm1600_vm0, %v1601_v8 }
 0x372   : > { %1498 = vmatprep.subr.mxu1 %v1601_v8 }
 0x3d5   : > { %v780_v19 = vpop.xlane.xlu1 %779 }
 0x3d6   : > { %1583 = vrcp.f32 %v780_v19 }
 0x3d9   : > { %v947_v20 = vpop.xlane.xlu0 %946 }
 0x3da   : > { %1585 = vrcp.f32 %v947_v20 }
 0x3dd   : > { %v1114_v21 = vpop.xlane.xlu1 %1113  ;;  %v1118_v27 = vpop.permute.xlu0 %1117 }
 0x3de   : > { %1587 = vrcp.f32 %v1114_v21 }
 0x3e0   : > { %v1584_v22 = vpop.eup %1583 }
 0x3e1   : > { %v782_v23 = vmul.f32 %v1584_v22, %v1576_v6  ;;  %v951_v24 = vpop.permute.xlu1 %950 }
 0x3e3   : > { %1491 = vmatmul.mubr.msk.f32.vlgmr.msra.gmra.mrb[6].mxu1 %vm525_vm2, %v782_v23 }
 0x3e4   : > { %v1586_v25 = vpop.eup %1585  ;;  %1499 = vmatpush3.msra.mxu1 %v951_v24  ;;  %1500 = vmatprep.mubr.msk.f32.mxu1 %vm1600_vm0, %v1601_v8 }
 0x3e5   : > { %v949_v26 = vmul.f32 %v1586_v25, %v1578_v9  ;;  %1508 = vmatprep.subr.mxu1 %v1601_v8 }
 0x3e7   : > { %1501 = vmatmul.mubr.msk.f32.vlgmr.msra.gmra.mrb[8].mxu1 %vm525_vm2, %v949_v26 }
 0x3e8   : > { %v1588_v28 = vpop.eup %1587  ;;  %1509 = vmatpush3.msra.mxu1 %v1118_v27  ;;  %1510 = vmatprep.mubr.msk.f32.mxu1 %vm1600_vm0, %v1601_v8  ;;  %v1212_v8 = vld [vmem:[%s1816_s5 + $0x10] sm:$0xff] }
 0x3e9   : > { %v1116_v29 = vmul.f32 %v1588_v28, %v1580_v12  ;;  %v1540_v36 = vpack.c.bf16 %v1213_v35, %v1212_v8 }
 0x3eb   : > { %1511 = vmatmul.mubr.msk.f32.vlgmr.msra.gmra.mrb[10].mxu1 %vm525_vm2, %v1116_v29  ;;  %1541 = vmatpush3.bf16.msra.mxu0 %v1540_v36 }
 0x443   : > { %v688_v30 = vpop.f32.mrb[4].mxu1 }
 0x444   : > { %v1482_v31 = vpop.f32.mrb[5].mxu1 }
 0x4b6   : > { %v855_v37 = vpop.f32.mrb[6].mxu1 }
 0x4b7   : > { %1194 = vrot.lane.b32.xlu1 %v855_v37, %s1609_s26  ;;  %v1492_v38 = vpop.f32.mrb[7].mxu1 }
 0x4ba   : > { %v1022_v39 = vpop.f32.mrb[8].mxu1 }
 0x4bb   : > { %1198 = vrot.lane.b32.xlu0 %v1022_v39, %s1610_s27  ;;  %v1502_v40 = vpop.f32.mrb[9].mxu1 }
 0x4be   : > { %v1189_v41 = vpop.f32.mrb[10].mxu1 }
 0x4bf   : > { %1202 = vrot.lane.b32.xlu1 %v1189_v41, %s1611_s28  ;;  %v1512_v5 = vpop.f32.mrb[11].mxu1 }
 0x529   : > { %v1195_v42 = vpop.permute.xlu1 %1194 }
 0x52a   : > { %v1205_v44 = vsel %vm525_vm2, %v688_v30, %v1195_v42 }
 0x52d   : > { %v1199_v43 = vpop.permute.xlu0 %1198 }
 0x52e   : > { %v1207_v45 = vsel %vm1206_vm4, %v1205_v44, %v1199_v43 }
 0x531   : > { %v1203_v46 = vpop.permute.xlu1 %1202 }
 0x532   : > { %v1209_v47 = vsel %vm1208_vm5, %v1207_v45, %v1203_v46 }
 0x533   : > { %1522 = vmatmul.mubr.msk.f32.vlgmr.msra.gmra.mrb[8].mxu0 %vm359_vm1, %v1209_v47 }
 0x606   : > { %v1290_v49 = vpop.f32.mrb[8].mxu0 }
 0x607   : > { %v1291_v50 = vadd.f32 %v1414_v48, %v1290_v49  ;;  %v1523_v51 = vpop.f32.mrb[9].mxu0 }
 0x609   : > { %v1294_v52 = vadd.f32 %v1291_v50, %v1701_v11  ;;  %v1416_v11 = vld [vmem:[%s1818_s7] ss:$0 sm:$0xff] }
 0x60b   : > { %v1297_v53 = vsel %vm359_vm1, %v1294_v52, 0.0 }
 0x60c   : > { %1298 = vadd.xlane.f32.xlu0 %v1297_v53 }
 0x699   : > { %v1299_v54 = vpop.xlane.xlu0 %1298 }
 0x69a   : > { %v1301_v55 = vmul.f32 0.03125, %v1299_v54 }
 0x69c   : > { %v1302_v56 = vsub.f32 %v1294_v52, %v1301_v55 }
 0x69e   : > { %v1303_v57 = vmul.f32 %v1302_v56, %v1302_v56 }
 0x6a0   : > { %v1304_v58 = vsel %vm359_vm1, %v1303_v57, 0.0 }
 0x6a1   : > { %1305 = vadd.xlane.f32.xlu1 %v1304_v58 }
 0x72e   : > { %v1306_v59 = vpop.xlane.xlu1 %1305 }
 0x72f   : > { %v1307_v60 = vmul.f32 0.03125, %v1306_v59 }
 0x731   : > { %v1308_v61 = vadd.f32 1e-05, %v1307_v60 }
 0x733   : > { %1589 = vrsqrt.f32 %v1308_v61 }
 0x73d   : > { %v1590_v62 = vpop.eup %1589 }
 0x73e   : > { %v1310_v63 = vmul.f32 %v1590_v62, %v1302_v56 }
 0x740   : > { %v1317_v1 = vmul.f32 %v1416_v11, %v1310_v63 }
 0x742   : > { %v1324_v2 = vadd.f32 %v1417_v0, %v1317_v1 }
 0x744   : > { %1325 = vst.msk [vmem:[%s344_s17] sm:$0xff] %vm359_vm1, %v1324_v2 }
 0x745 PF: > { %s19_s30 = sadd.s32 1, %s1597_s30  }
 0x746   : > { %p16_p4 = scmp.ge.s32.totalorder %s19_s30, 4  }
 0x748   :  { %18 = sbr.rel (!%p16_p4) target bundleno = 1 (0x1), region = 89 }

</bundles_post_ra>
